<compile_context>
chip_gen: v7x
topology: tpu7x:2x2x1
jax: 0.10.0
libtpu: 0.0.40
codegen_flags: <defaults>
</compile_context>

<pallas_src>
import functools

import jax
import jax.numpy as jnp
from jax.experimental import pallas as pl
from jax.experimental.pallas import tpu as pltpu


def _round_up(v, m):
    return ((v + m - 1) // m) * m


def _sigmoid(z):
    # sigmoid(z) == 0.5 * (tanh(0.5*z) + 1): a single EUP tanh per element
    # instead of exp + divide (there is only one EUP slot per bundle).
    return 0.5 * jnp.tanh(0.5 * z) + 0.5


def _vmem_capacity_bytes():
    try:
        info = pltpu.get_tpu_info()
        cap = getattr(info, "vmem_capacity_bytes", None)
        if cap:
            return int(cap)
    except Exception:
        pass
    return 64 * 1024 * 1024   # conservative: v7x per-TensorCore VMEM


def _lstm_chunk_kernel(xz_ref, h0_ref, c0_ref, wh_ref, y_ref, cT_ref,
                       h_sc, c_sc, *, seq_len, tail_masked):
    """One grid step == T timesteps for one batch tile.

    xz_ref : [T, BT, 4H]  precomputed x_t @ Wx + b (seq-major gate pre-acts)
    h0_ref : [BT, H]      initial hidden state
    c0_ref : [BT, H]      initial cell state
    wh_ref : [H, 4H]      fused recurrent weights (gate order i, f, o, g)
    y_ref  : [BT, T, H]   per-step hidden outputs, written in final batch-major layout
    cT_ref : [BT, H]      final cell state (written on last seq chunk)
    h_sc/c_sc : [BT, H] f32 VMEM scratch carrying the recurrence
    """
    s = pl.program_id(1)                      # seq-chunk index (inner axis)
    T = y_ref.shape[1]
    H = h_sc.shape[-1]

    @pl.when(s == 0)
    def _():
        h_sc[...] = h0_ref[...].astype(jnp.float32)
        c_sc[...] = c0_ref[...].astype(jnp.float32)

    wh = wh_ref[...]                          # [H, 4H]; loaded once per chunk
    # TODO(synk): bf16 operands (f32 accumulate) here for large H on v6e/v7x.

    # Fully unrolled Python loop (T <= 32): keeps every sublane index of the
    # batch-major y store static, and the recurrence is carried through VMEM
    # scratch refs, so live ranges stay bounded per step.
    for t in range(T):
        h_prev = h_sc[...]                    # [BT, H] f32
        c_prev = c_sc[...]                    # [BT, H] f32
        # Single fused MXU matmul for all four gates.
        z = xz_ref[t].astype(jnp.float32) + jnp.dot(
            h_prev, wh, preferred_element_type=jnp.float32)     # [BT, 4H]
        i_g = _sigmoid(z[:, 0 * H:1 * H])
        f_g = _sigmoid(z[:, 1 * H:2 * H])
        o_g = _sigmoid(z[:, 2 * H:3 * H])
        g_g = jnp.tanh(z[:, 3 * H:4 * H])
        c_new = f_g * c_prev + i_g * g_g
        h_new = o_g * jnp.tanh(c_new)

        def commit(h_new=h_new, c_new=c_new, t=t):
            h_sc[...] = h_new
            c_sc[...] = c_new
            # Batch-major write: y leaves the kernel in its final layout, so
            # the wrapper does no transpose (no extra HBM round trip).
            y_ref[:, t, :] = h_new.astype(y_ref.dtype)

        if tail_masked:
            # Padded-seq tail: only commit state/output for real timesteps.
            pl.when(s * T + t < seq_len)(commit)
        else:
            commit()

    @pl.when(s == pl.num_programs(1) - 1)
    def _():
        cT_ref[...] = c_sc[...].astype(cT_ref.dtype)


def lstm_layer(x, h0, c0, wx, wh, b, *, max_seq_chunk=32):
    """x: [B, S, XF], h0/c0: [B, H]. Returns (y [B, S, H], h_T [B, H], c_T [B, H])."""
    B, S, XF = x.shape
    H = h0.shape[-1]

    # ---- lane / sublane alignment -------------------------------------------
    Hp = max(128, _round_up(H, 128))          # gate slices & y last dim lane-aligned
    G = 4 * Hp
    Bp = _round_up(B, 8)
    pad_h = Hp - H

    # Zero-padded weights/bias/state keep padded hidden columns identically 0
    # through the recurrence (z_pad = 0 -> gates 0.5/0, c_pad stays 0).
    wx_p = jnp.pad(wx, ((0, 0), (0, 0), (0, pad_h)))
    wh_p = jnp.pad(wh, ((0, 0), (0, pad_h), (0, pad_h)))
    b_p = jnp.pad(b, ((0, 0), (0, 0), (0, pad_h)))

    # Fuse per-gate weights: Wx -> [XF, 4H], Wh -> [H, 4H], b -> [1, 4H].
    wx_f = jnp.transpose(wx_p, (1, 0, 2)).reshape(XF, G)
    wh_f = jnp.transpose(wh_p, (1, 0, 2)).reshape(Hp, G)
    b_f = jnp.transpose(b_p, (1, 0, 2)).reshape(1, G)

    x_p = jnp.pad(x, ((0, Bp - B), (0, 0), (0, 0)))
    h0_p = jnp.pad(h0, ((0, Bp - B), (0, pad_h)))
    c0_p = jnp.pad(c0, ((0, Bp - B), (0, pad_h)))

    # ---- hoisted input projection (fused with batch->seq transpose) ---------
    # Precision.HIGH (bf16_3x): ~2x fewer MXU passes than HIGHEST, well inside
    # the 1e-5 tolerance for these magnitudes.
    xz = jnp.einsum('bsx,xg->sbg', x_p.astype(jnp.float32), wx_f,
                    precision=jax.lax.Precision.HIGH) + b_f[None]   # [S, Bp, 4H]

    # ---- generation-aware tile sizing ----------------------------------------
    cap = _vmem_capacity_bytes()              # 128 MiB v5e/v6e, 64 MiB v7x
    budget = int(cap * 0.8)

    # Batch tile: only split when each half still feeds the MXU (>=128 rows);
    # on single-TensorCore chips a split just shrinks the matmul M dim.
    BT = Bp // 2 if (Bp >= 256 and (Bp // 2) % 8 == 0) else Bp

    # Seq chunk T (multiple of 8): largest fitting the VMEM budget, <= 32.
    fixed = (Hp * G * 4                        # wh (single-buffered)
             + 2 * BT * Hp * 4                 # h0 + c0
             + 2 * BT * Hp * 4                 # h/c scratch
             + 2 * BT * Hp * 4)                # cT output block (double-buffered)
    per_t = BT * 4 * (2 * G + 2 * Hp)          # xz in + y out, double-buffered, f32
    t_fit = max(8, ((budget - fixed) // per_t) // 8 * 8)
    T = min(int(max_seq_chunk), int(t_fit), _round_up(S, 8))
    T = max(8, (T // 8) * 8)

    Sp = _round_up(S, T)                       # pad S with a masked tail (never T=1)
    NS = Sp // T
    NB = Bp // BT
    if Sp != S:
        xz = jnp.pad(xz, ((0, Sp - S), (0, 0), (0, 0)))

    kernel = functools.partial(_lstm_chunk_kernel,
                               seq_len=S, tail_masked=(Sp != S))

    y_p, cT_p = pl.pallas_call(
        kernel,
        out_shape=(
            jax.ShapeDtypeStruct((Bp, Sp, Hp), x.dtype),   # y, batch-major
            jax.ShapeDtypeStruct((Bp, Hp), x.dtype),       # final c
        ),
        grid_spec=pltpu.PrefetchScalarGridSpec(
            num_scalar_prefetch=0,
            grid=(NB, NS),
            in_specs=[
                pl.BlockSpec((T, BT, G), lambda bb, s: (s, bb, 0)),    # gate pre-acts
                pl.BlockSpec((BT, Hp), lambda bb, s: (bb, 0)),         # h0
                pl.BlockSpec((BT, Hp), lambda bb, s: (bb, 0)),         # c0
                # Invariant weights: single-buffer (constant index_map, so
                # double-buffering only doubles the VMEM footprint).
                pl.BlockSpec((Hp, G), lambda bb, s: (0, 0),
                             pipeline_mode=pl.Buffered(1)),            # fused Wh
            ],
            out_specs=[
                pl.BlockSpec((BT, T, Hp), lambda bb, s: (bb, s, 0)),   # y chunk
                pl.BlockSpec((BT, Hp), lambda bb, s: (bb, 0)),         # final c
            ],
            scratch_shapes=[
                pltpu.VMEM((BT, Hp), jnp.float32),                     # h carry
                pltpu.VMEM((BT, Hp), jnp.float32),                     # c carry
            ],
        ),
        compiler_params=pltpu.CompilerParams(
            dimension_semantics=("parallel", "arbitrary"),
            vmem_limit_bytes=int(cap * 0.9),
        ),
    )(xz, h0_p, c0_p, wh_f)

    y = y_p[:B, :S, :H]                       # [B, S, H], already batch-major
    hT = y[:, -1, :]                          # final hidden == last output
    cT = cT_p[:B, :H]
    return y, hT, cT


def lstm_layer_ref(x, h0, c0, wx, wh, b):
    """Pure-JAX reference matching TextLSTMLayer.forward semantics."""
    def step(carry, x_t):
        h, c = carry
        z = [x_t @ wx[k] + h @ wh[k] + b[k] for k in range(4)]
        i_g = jax.nn.sigmoid(z[0])
        f_g = jax.nn.sigmoid(z[1])
        o_g = jax.nn.sigmoid(z[2])
        g_g = jnp.tanh(z[3])
        c_n = f_g * c + i_g * g_g
        h_n = o_g * jnp.tanh(c_n)
        return (h_n, c_n), h_n

    (hT, cT), y_sm = jax.lax.scan(step, (h0, c0), jnp.transpose(x, (1, 0, 2)))
    return jnp.transpose(y_sm, (1, 0, 2)), hT, cT


if __name__ == "__main__":
    B, S, XF, H = 4, 8, 16, 32
    key = jax.random.PRNGKey(0)
    kx, kh, kc, kwx, kwh, kb = jax.random.split(key, 6)

    x = jax.random.normal(kx, (B, S, XF), dtype=jnp.float32)
    h0 = jax.random.normal(kh, (B, H), dtype=jnp.float32)
    c0 = jax.random.normal(kc, (B, H), dtype=jnp.float32)

    # Deterministic synthetic parameters. Gate order (i, f, o, g).
    # wx[k] == W_i{i,f,o,g}.T ; wh[k] == W_h{i,f,o,g}.T ; b[k] == b_i* + b_h*.
    scale = 0.1
    wx = scale * jax.random.normal(kwx, (4, XF, H), dtype=jnp.float32)
    wh = scale * jax.random.normal(kwh, (4, H, H), dtype=jnp.float32)
    b = scale * jax.random.normal(kb, (4, 1, H), dtype=jnp.float32)

    y, hT, cT = lstm_layer(x, h0, c0, wx, wh, b)
    jax.block_until_ready((y, hT, cT))

    y_r, hT_r, cT_r = lstm_layer_ref(x, h0, c0, wx, wh, b)
    assert jnp.allclose(y, y_r, atol=1e-5, rtol=1e-5)
    assert jnp.allclose(hT, hT_r, atol=1e-5, rtol=1e-5)
    assert jnp.allclose(cT, cT_r, atol=1e-5, rtol=1e-5)

    print("KERNEL_OK")
</pallas_src>

<mosaic_0001>
module attributes {stable_mosaic.version = 11 : i64} {
  func.func @_lstm_chunk_kernel(%arg0: i32, %arg1: i32, %arg2: memref<8x8x512xf32, #tpu.memory_space<vmem>>, %arg3: memref<8x128xf32, #tpu.memory_space<vmem>>, %arg4: memref<8x128xf32, #tpu.memory_space<vmem>>, %arg5: memref<128x512xf32, #tpu.memory_space<vmem>>, %arg6: memref<8x8x128xf32, #tpu.memory_space<vmem>>, %arg7: memref<8x128xf32, #tpu.memory_space<vmem>>, %arg8: memref<8x128xf32, #tpu.memory_space<vmem>>, %arg9: memref<8x128xf32, #tpu.memory_space<vmem>>) attributes {dimension_semantics = [#tpu.dimension_semantics<parallel>, #tpu.dimension_semantics<arbitrary>], iteration_bounds = array<i64: 1, 1>, scalar_prefetch = 0 : i64, scratch_operands = 2 : i64, tpu.core_type = #tpu.core_type<tc>, window_params = [{transform_indices = @transform_0, window_bounds = array<i64: 8, 8, 512>}, {transform_indices = @transform_1, window_bounds = array<i64: 8, 128>}, {transform_indices = @transform_2, window_bounds = array<i64: 8, 128>}, {pipeline_mode = #tpu.pipeline_mode<synchronous>, transform_indices = @transform_3, window_bounds = array<i64: 128, 512>}, {transform_indices = @transform_4, window_bounds = array<i64: 8, 8, 128>}, {transform_indices = @transform_5, window_bounds = array<i64: 8, 128>}]} {
    %c0_i32 = arith.constant 0 : i32
    %0 = arith.cmpi eq, %arg1, %c0_i32 : i32
    %1 = arith.extui %0 : i1 to i32
    %c0_i32_0 = arith.constant 0 : i32
    %2 = arith.cmpi ne, %1, %c0_i32_0 : i32
    scf.if %2 {
      %c0_188 = arith.constant 0 : index
      %c0_189 = arith.constant 0 : index
      %343 = vector.load %arg3[%c0_188, %c0_189] : memref<8x128xf32, #tpu.memory_space<vmem>>, vector<8x128xf32>
      %c0_190 = arith.constant 0 : index
      %c0_191 = arith.constant 0 : index
      %344 = vector.load %arg8[%c0_190, %c0_191] : memref<8x128xf32, #tpu.memory_space<vmem>>, vector<8x128xf32>
      tpu.vector_store %arg8[%c0_190, %c0_191], %343 {strides = array<i32>} : memref<8x128xf32, #tpu.memory_space<vmem>>, vector<8x128xf32>,
      %c0_192 = arith.constant 0 : index
      %c0_193 = arith.constant 0 : index
      %345 = vector.load %arg4[%c0_192, %c0_193] : memref<8x128xf32, #tpu.memory_space<vmem>>, vector<8x128xf32>
      %c0_194 = arith.constant 0 : index
      %c0_195 = arith.constant 0 : index
      %346 = vector.load %arg9[%c0_194, %c0_195] : memref<8x128xf32, #tpu.memory_space<vmem>>, vector<8x128xf32>
      tpu.vector_store %arg9[%c0_194, %c0_195], %345 {strides = array<i32>} : memref<8x128xf32, #tpu.memory_space<vmem>>, vector<8x128xf32>,
    } else {
    }
    %c0 = arith.constant 0 : index
    %c0_1 = arith.constant 0 : index
    %3 = vector.load %arg5[%c0, %c0_1] : memref<128x512xf32, #tpu.memory_space<vmem>>, vector<128x512xf32>
    %c0_2 = arith.constant 0 : index
    %c0_3 = arith.constant 0 : index
    %4 = vector.load %arg8[%c0_2, %c0_3] : memref<8x128xf32, #tpu.memory_space<vmem>>, vector<8x128xf32>
    %c0_4 = arith.constant 0 : index
    %c0_5 = arith.constant 0 : index
    %5 = vector.load %arg9[%c0_4, %c0_5] : memref<8x128xf32, #tpu.memory_space<vmem>>, vector<8x128xf32>
    %c0_6 = arith.constant 0 : index
    %c0_7 = arith.constant 0 : index
    %c0_8 = arith.constant 0 : index
    %6 = vector.load %arg2[%c0_6, %c0_7, %c0_8] : memref<8x8x512xf32, #tpu.memory_space<vmem>>, vector<1x8x512xf32>
    %7 = vector.shape_cast %6 : vector<1x8x512xf32> to vector<8x512xf32>
    %cst = arith.constant dense<0.000000e+00> : vector<8x512xf32>
    %8 = tpu.matmul %4, %3, %cst {dimension_numbers = #tpu.dot_dimension_numbers<[1], [0], [0], [1], [0, 0, 1, 1], [], []>} : vector<8x128xf32>, vector<128x512xf32>, vector<8x512xf32> -> vector<8x512xf32>
    %9 = arith.addf %7, %8 : vector<8x512xf32>
    %10 = vector.extract_strided_slice %9 {offsets = [0, 0], sizes = [8, 128], strides = [1, 1]} : vector<8x512xf32> to vector<8x128xf32>
    %cst_9 = arith.constant 5.000000e-01 : f32
    %11 = vector.broadcast %cst_9 : f32 to vector<8x128xf32>
    %12 = arith.mulf %11, %10 : vector<8x128xf32>
    %13 = math.tanh %12 : vector<8x128xf32>
    %cst_10 = arith.constant 5.000000e-01 : f32
    %14 = vector.broadcast %cst_10 : f32 to vector<8x128xf32>
    %15 = arith.mulf %14, %13 : vector<8x128xf32>
    %cst_11 = arith.constant 5.000000e-01 : f32
    %16 = vector.broadcast %cst_11 : f32 to vector<8x128xf32>
    %17 = arith.addf %15, %16 : vector<8x128xf32>
    %18 = vector.extract_strided_slice %9 {offsets = [0, 128], sizes = [8, 128], strides = [1, 1]} : vector<8x512xf32> to vector<8x128xf32>
    %cst_12 = arith.constant 5.000000e-01 : f32
    %19 = vector.broadcast %cst_12 : f32 to vector<8x128xf32>
    %20 = arith.mulf %19, %18 : vector<8x128xf32>
    %21 = math.tanh %20 : vector<8x128xf32>
    %cst_13 = arith.constant 5.000000e-01 : f32
    %22 = vector.broadcast %cst_13 : f32 to vector<8x128xf32>
    %23 = arith.mulf %22, %21 : vector<8x128xf32>
    %cst_14 = arith.constant 5.000000e-01 : f32
    %24 = vector.broadcast %cst_14 : f32 to vector<8x128xf32>
    %25 = arith.addf %23, %24 : vector<8x128xf32>
    %26 = vector.extract_strided_slice %9 {offsets = [0, 256], sizes = [8, 128], strides = [1, 1]} : vector<8x512xf32> to vector<8x128xf32>
    %cst_15 = arith.constant 5.000000e-01 : f32
    %27 = vector.broadcast %cst_15 : f32 to vector<8x128xf32>
    %28 = arith.mulf %27, %26 : vector<8x128xf32>
    %29 = math.tanh %28 : vector<8x128xf32>
    %cst_16 = arith.constant 5.000000e-01 : f32
    %30 = vector.broadcast %cst_16 : f32 to vector<8x128xf32>
    %31 = arith.mulf %30, %29 : vector<8x128xf32>
    %cst_17 = arith.constant 5.000000e-01 : f32
    %32 = vector.broadcast %cst_17 : f32 to vector<8x128xf32>
    %33 = arith.addf %31, %32 : vector<8x128xf32>
    %34 = vector.extract_strided_slice %9 {offsets = [0, 384], sizes = [8, 128], strides = [1, 1]} : vector<8x512xf32> to vector<8x128xf32>
    %35 = math.tanh %34 : vector<8x128xf32>
    %36 = arith.mulf %25, %5 : vector<8x128xf32>
    %37 = arith.mulf %17, %35 : vector<8x128xf32>
    %38 = arith.addf %36, %37 : vector<8x128xf32>
    %39 = math.tanh %38 : vector<8x128xf32>
    %40 = arith.mulf %33, %39 : vector<8x128xf32>
    %c0_18 = arith.constant 0 : index
    %c0_19 = arith.constant 0 : index
    %41 = vector.load %arg8[%c0_18, %c0_19] : memref<8x128xf32, #tpu.memory_space<vmem>>, vector<8x128xf32>
    tpu.vector_store %arg8[%c0_18, %c0_19], %40 {strides = array<i32>} : memref<8x128xf32, #tpu.memory_space<vmem>>, vector<8x128xf32>,
    %c0_20 = arith.constant 0 : index
    %c0_21 = arith.constant 0 : index
    %42 = vector.load %arg9[%c0_20, %c0_21] : memref<8x128xf32, #tpu.memory_space<vmem>>, vector<8x128xf32>
    tpu.vector_store %arg9[%c0_20, %c0_21], %38 {strides = array<i32>} : memref<8x128xf32, #tpu.memory_space<vmem>>, vector<8x128xf32>,
    %c0_22 = arith.constant 0 : index
    %c0_23 = arith.constant 0 : index
    %c0_24 = arith.constant 0 : index
    %43 = vector.load %arg6[%c0_22, %c0_23, %c0_24] : memref<8x8x128xf32, #tpu.memory_space<vmem>>, vector<8x1x128xf32>
    %44 = vector.shape_cast %43 : vector<8x1x128xf32> to vector<8x128xf32>
    %45 = vector.shape_cast %40 : vector<8x128xf32> to vector<8x1x128xf32>
    tpu.vector_store %arg6[%c0_22, %c0_23, %c0_24], %45 {strides = array<i32>} : memref<8x8x128xf32, #tpu.memory_space<vmem>>, vector<8x1x128xf32>,
    %c0_25 = arith.constant 0 : index
    %c0_26 = arith.constant 0 : index
    %46 = vector.load %arg8[%c0_25, %c0_26] : memref<8x128xf32, #tpu.memory_space<vmem>>, vector<8x128xf32>
    %c0_27 = arith.constant 0 : index
    %c0_28 = arith.constant 0 : index
    %47 = vector.load %arg9[%c0_27, %c0_28] : memref<8x128xf32, #tpu.memory_space<vmem>>, vector<8x128xf32>
    %c1 = arith.constant 1 : index
    %c0_29 = arith.constant 0 : index
    %c0_30 = arith.constant 0 : index
    %48 = vector.load %arg2[%c1, %c0_29, %c0_30] : memref<8x8x512xf32, #tpu.memory_space<vmem>>, vector<1x8x512xf32>
    %49 = vector.shape_cast %48 : vector<1x8x512xf32> to vector<8x512xf32>
    %cst_31 = arith.constant dense<0.000000e+00> : vector<8x512xf32>
    %50 = tpu.matmul %46, %3, %cst_31 {dimension_numbers = #tpu.dot_dimension_numbers<[1], [0], [0], [1], [0, 0, 1, 1], [], []>} : vector<8x128xf32>, vector<128x512xf32>, vector<8x512xf32> -> vector<8x512xf32>
    %51 = arith.addf %49, %50 : vector<8x512xf32>
    %52 = vector.extract_strided_slice %51 {offsets = [0, 0], sizes = [8, 128], strides = [1, 1]} : vector<8x512xf32> to vector<8x128xf32>
    %cst_32 = arith.constant 5.000000e-01 : f32
    %53 = vector.broadcast %cst_32 : f32 to vector<8x128xf32>
    %54 = arith.mulf %53, %52 : vector<8x128xf32>
    %55 = math.tanh %54 : vector<8x128xf32>
    %cst_33 = arith.constant 5.000000e-01 : f32
    %56 = vector.broadcast %cst_33 : f32 to vector<8x128xf32>
    %57 = arith.mulf %56, %55 : vector<8x128xf32>
    %cst_34 = arith.constant 5.000000e-01 : f32
    %58 = vector.broadcast %cst_34 : f32 to vector<8x128xf32>
    %59 = arith.addf %57, %58 : vector<8x128xf32>
    %60 = vector.extract_strided_slice %51 {offsets = [0, 128], sizes = [8, 128], strides = [1, 1]} : vector<8x512xf32> to vector<8x128xf32>
    %cst_35 = arith.constant 5.000000e-01 : f32
    %61 = vector.broadcast %cst_35 : f32 to vector<8x128xf32>
    %62 = arith.mulf %61, %60 : vector<8x128xf32>
    %63 = math.tanh %62 : vector<8x128xf32>
    %cst_36 = arith.constant 5.000000e-01 : f32
    %64 = vector.broadcast %cst_36 : f32 to vector<8x128xf32>
    %65 = arith.mulf %64, %63 : vector<8x128xf32>
    %cst_37 = arith.constant 5.000000e-01 : f32
    %66 = vector.broadcast %cst_37 : f32 to vector<8x128xf32>
    %67 = arith.addf %65, %66 : vector<8x128xf32>
    %68 = vector.extract_strided_slice %51 {offsets = [0, 256], sizes = [8, 128], strides = [1, 1]} : vector<8x512xf32> to vector<8x128xf32>
    %cst_38 = arith.constant 5.000000e-01 : f32
    %69 = vector.broadcast %cst_38 : f32 to vector<8x128xf32>
    %70 = arith.mulf %69, %68 : vector<8x128xf32>
    %71 = math.tanh %70 : vector<8x128xf32>
    %cst_39 = arith.constant 5.000000e-01 : f32
    %72 = vector.broadcast %cst_39 : f32 to vector<8x128xf32>
    %73 = arith.mulf %72, %71 : vector<8x128xf32>
    %cst_40 = arith.constant 5.000000e-01 : f32
    %74 = vector.broadcast %cst_40 : f32 to vector<8x128xf32>
    %75 = arith.addf %73, %74 : vector<8x128xf32>
    %76 = vector.extract_strided_slice %51 {offsets = [0, 384], sizes = [8, 128], strides = [1, 1]} : vector<8x512xf32> to vector<8x128xf32>
    %77 = math.tanh %76 : vector<8x128xf32>
    %78 = arith.mulf %67, %47 : vector<8x128xf32>
    %79 = arith.mulf %59, %77 : vector<8x128xf32>
    %80 = arith.addf %78, %79 : vector<8x128xf32>
    %81 = math.tanh %80 : vector<8x128xf32>
    %82 = arith.mulf %75, %81 : vector<8x128xf32>
    %c0_41 = arith.constant 0 : index
    %c0_42 = arith.constant 0 : index
    %83 = vector.load %arg8[%c0_41, %c0_42] : memref<8x128xf32, #tpu.memory_space<vmem>>, vector<8x128xf32>
    tpu.vector_store %arg8[%c0_41, %c0_42], %82 {strides = array<i32>} : memref<8x128xf32, #tpu.memory_space<vmem>>, vector<8x128xf32>,
    %c0_43 = arith.constant 0 : index
    %c0_44 = arith.constant 0 : index
    %84 = vector.load %arg9[%c0_43, %c0_44] : memref<8x128xf32, #tpu.memory_space<vmem>>, vector<8x128xf32>
    tpu.vector_store %arg9[%c0_43, %c0_44], %80 {strides = array<i32>} : memref<8x128xf32, #tpu.memory_space<vmem>>, vector<8x128xf32>,
    %c0_45 = arith.constant 0 : index
    %c1_46 = arith.constant 1 : index
    %c0_47 = arith.constant 0 : index
    %85 = vector.load %arg6[%c0_45, %c1_46, %c0_47] : memref<8x8x128xf32, #tpu.memory_space<vmem>>, vector<8x1x128xf32>
    %86 = vector.shape_cast %85 : vector<8x1x128xf32> to vector<8x128xf32>
    %87 = vector.shape_cast %82 : vector<8x128xf32> to vector<8x1x128xf32>
    tpu.vector_store %arg6[%c0_45, %c1_46, %c0_47], %87 {strides = array<i32>} : memref<8x8x128xf32, #tpu.memory_space<vmem>>, vector<8x1x128xf32>,
    %c0_48 = arith.constant 0 : index
    %c0_49 = arith.constant 0 : index
    %88 = vector.load %arg8[%c0_48, %c0_49] : memref<8x128xf32, #tpu.memory_space<vmem>>, vector<8x128xf32>
    %c0_50 = arith.constant 0 : index
    %c0_51 = arith.constant 0 : index
    %89 = vector.load %arg9[%c0_50, %c0_51] : memref<8x128xf32, #tpu.memory_space<vmem>>, vector<8x128xf32>
    %c2 = arith.constant 2 : index
    %c0_52 = arith.constant 0 : index
    %c0_53 = arith.constant 0 : index
    %90 = vector.load %arg2[%c2, %c0_52, %c0_53] : memref<8x8x512xf32, #tpu.memory_space<vmem>>, vector<1x8x512xf32>
    %91 = vector.shape_cast %90 : vector<1x8x512xf32> to vector<8x512xf32>
    %cst_54 = arith.constant dense<0.000000e+00> : vector<8x512xf32>
    %92 = tpu.matmul %88, %3, %cst_54 {dimension_numbers = #tpu.dot_dimension_numbers<[1], [0], [0], [1], [0, 0, 1, 1], [], []>} : vector<8x128xf32>, vector<128x512xf32>, vector<8x512xf32> -> vector<8x512xf32>
    %93 = arith.addf %91, %92 : vector<8x512xf32>
    %94 = vector.extract_strided_slice %93 {offsets = [0, 0], sizes = [8, 128], strides = [1, 1]} : vector<8x512xf32> to vector<8x128xf32>
    %cst_55 = arith.constant 5.000000e-01 : f32
    %95 = vector.broadcast %cst_55 : f32 to vector<8x128xf32>
    %96 = arith.mulf %95, %94 : vector<8x128xf32>
    %97 = math.tanh %96 : vector<8x128xf32>
    %cst_56 = arith.constant 5.000000e-01 : f32
    %98 = vector.broadcast %cst_56 : f32 to vector<8x128xf32>
    %99 = arith.mulf %98, %97 : vector<8x128xf32>
    %cst_57 = arith.constant 5.000000e-01 : f32
    %100 = vector.broadcast %cst_57 : f32 to vector<8x128xf32>
    %101 = arith.addf %99, %100 : vector<8x128xf32>
    %102 = vector.extract_strided_slice %93 {offsets = [0, 128], sizes = [8, 128], strides = [1, 1]} : vector<8x512xf32> to vector<8x128xf32>
    %cst_58 = arith.constant 5.000000e-01 : f32
    %103 = vector.broadcast %cst_58 : f32 to vector<8x128xf32>
    %104 = arith.mulf %103, %102 : vector<8x128xf32>
    %105 = math.tanh %104 : vector<8x128xf32>
    %cst_59 = arith.constant 5.000000e-01 : f32
    %106 = vector.broadcast %cst_59 : f32 to vector<8x128xf32>
    %107 = arith.mulf %106, %105 : vector<8x128xf32>
    %cst_60 = arith.constant 5.000000e-01 : f32
    %108 = vector.broadcast %cst_60 : f32 to vector<8x128xf32>
    %109 = arith.addf %107, %108 : vector<8x128xf32>
    %110 = vector.extract_strided_slice %93 {offsets = [0, 256], sizes = [8, 128], strides = [1, 1]} : vector<8x512xf32> to vector<8x128xf32>
    %cst_61 = arith.constant 5.000000e-01 : f32
    %111 = vector.broadcast %cst_61 : f32 to vector<8x128xf32>
    %112 = arith.mulf %111, %110 : vector<8x128xf32>
    %113 = math.tanh %112 : vector<8x128xf32>
    %cst_62 = arith.constant 5.000000e-01 : f32
    %114 = vector.broadcast %cst_62 : f32 to vector<8x128xf32>
    %115 = arith.mulf %114, %113 : vector<8x128xf32>
    %cst_63 = arith.constant 5.000000e-01 : f32
    %116 = vector.broadcast %cst_63 : f32 to vector<8x128xf32>
    %117 = arith.addf %115, %116 : vector<8x128xf32>
    %118 = vector.extract_strided_slice %93 {offsets = [0, 384], sizes = [8, 128], strides = [1, 1]} : vector<8x512xf32> to vector<8x128xf32>
    %119 = math.tanh %118 : vector<8x128xf32>
    %120 = arith.mulf %109, %89 : vector<8x128xf32>
    %121 = arith.mulf %101, %119 : vector<8x128xf32>
    %122 = arith.addf %120, %121 : vector<8x128xf32>
    %123 = math.tanh %122 : vector<8x128xf32>
    %124 = arith.mulf %117, %123 : vector<8x128xf32>
    %c0_64 = arith.constant 0 : index
    %c0_65 = arith.constant 0 : index
    %125 = vector.load %arg8[%c0_64, %c0_65] : memref<8x128xf32, #tpu.memory_space<vmem>>, vector<8x128xf32>
    tpu.vector_store %arg8[%c0_64, %c0_65], %124 {strides = array<i32>} : memref<8x128xf32, #tpu.memory_space<vmem>>, vector<8x128xf32>,
    %c0_66 = arith.constant 0 : index
    %c0_67 = arith.constant 0 : index
    %126 = vector.load %arg9[%c0_66, %c0_67] : memref<8x128xf32, #tpu.memory_space<vmem>>, vector<8x128xf32>
    tpu.vector_store %arg9[%c0_66, %c0_67], %122 {strides = array<i32>} : memref<8x128xf32, #tpu.memory_space<vmem>>, vector<8x128xf32>,
    %c0_68 = arith.constant 0 : index
    %c2_69 = arith.constant 2 : index
    %c0_70 = arith.constant 0 : index
    %127 = vector.load %arg6[%c0_68, %c2_69, %c0_70] : memref<8x8x128xf32, #tpu.memory_space<vmem>>, vector<8x1x128xf32>
    %128 = vector.shape_cast %127 : vector<8x1x128xf32> to vector<8x128xf32>
    %129 = vector.shape_cast %124 : vector<8x128xf32> to vector<8x1x128xf32>
    tpu.vector_store %arg6[%c0_68, %c2_69, %c0_70], %129 {strides = array<i32>} : memref<8x8x128xf32, #tpu.memory_space<vmem>>, vector<8x1x128xf32>,
    %c0_71 = arith.constant 0 : index
    %c0_72 = arith.constant 0 : index
    %130 = vector.load %arg8[%c0_71, %c0_72] : memref<8x128xf32, #tpu.memory_space<vmem>>, vector<8x128xf32>
    %c0_73 = arith.constant 0 : index
    %c0_74 = arith.constant 0 : index
    %131 = vector.load %arg9[%c0_73, %c0_74] : memref<8x128xf32, #tpu.memory_space<vmem>>, vector<8x128xf32>
    %c3 = arith.constant 3 : index
    %c0_75 = arith.constant 0 : index
    %c0_76 = arith.constant 0 : index
    %132 = vector.load %arg2[%c3, %c0_75, %c0_76] : memref<8x8x512xf32, #tpu.memory_space<vmem>>, vector<1x8x512xf32>
    %133 = vector.shape_cast %132 : vector<1x8x512xf32> to vector<8x512xf32>
    %cst_77 = arith.constant dense<0.000000e+00> : vector<8x512xf32>
    %134 = tpu.matmul %130, %3, %cst_77 {dimension_numbers = #tpu.dot_dimension_numbers<[1], [0], [0], [1], [0, 0, 1, 1], [], []>} : vector<8x128xf32>, vector<128x512xf32>, vector<8x512xf32> -> vector<8x512xf32>
    %135 = arith.addf %133, %134 : vector<8x512xf32>
    %136 = vector.extract_strided_slice %135 {offsets = [0, 0], sizes = [8, 128], strides = [1, 1]} : vector<8x512xf32> to vector<8x128xf32>
    %cst_78 = arith.constant 5.000000e-01 : f32
    %137 = vector.broadcast %cst_78 : f32 to vector<8x128xf32>
    %138 = arith.mulf %137, %136 : vector<8x128xf32>
    %139 = math.tanh %138 : vector<8x128xf32>
    %cst_79 = arith.constant 5.000000e-01 : f32
    %140 = vector.broadcast %cst_79 : f32 to vector<8x128xf32>
    %141 = arith.mulf %140, %139 : vector<8x128xf32>
    %cst_80 = arith.constant 5.000000e-01 : f32
    %142 = vector.broadcast %cst_80 : f32 to vector<8x128xf32>
    %143 = arith.addf %141, %142 : vector<8x128xf32>
    %144 = vector.extract_strided_slice %135 {offsets = [0, 128], sizes = [8, 128], strides = [1, 1]} : vector<8x512xf32> to vector<8x128xf32>
    %cst_81 = arith.constant 5.000000e-01 : f32
    %145 = vector.broadcast %cst_81 : f32 to vector<8x128xf32>
    %146 = arith.mulf %145, %144 : vector<8x128xf32>
    %147 = math.tanh %146 : vector<8x128xf32>
    %cst_82 = arith.constant 5.000000e-01 : f32
    %148 = vector.broadcast %cst_82 : f32 to vector<8x128xf32>
    %149 = arith.mulf %148, %147 : vector<8x128xf32>
    %cst_83 = arith.constant 5.000000e-01 : f32
    %150 = vector.broadcast %cst_83 : f32 to vector<8x128xf32>
    %151 = arith.addf %149, %150 : vector<8x128xf32>
    %152 = vector.extract_strided_slice %135 {offsets = [0, 256], sizes = [8, 128], strides = [1, 1]} : vector<8x512xf32> to vector<8x128xf32>
    %cst_84 = arith.constant 5.000000e-01 : f32
    %153 = vector.broadcast %cst_84 : f32 to vector<8x128xf32>
    %154 = arith.mulf %153, %152 : vector<8x128xf32>
    %155 = math.tanh %154 : vector<8x128xf32>
    %cst_85 = arith.constant 5.000000e-01 : f32
    %156 = vector.broadcast %cst_85 : f32 to vector<8x128xf32>
    %157 = arith.mulf %156, %155 : vector<8x128xf32>
    %cst_86 = arith.constant 5.000000e-01 : f32
    %158 = vector.broadcast %cst_86 : f32 to vector<8x128xf32>
    %159 = arith.addf %157, %158 : vector<8x128xf32>
    %160 = vector.extract_strided_slice %135 {offsets = [0, 384], sizes = [8, 128], strides = [1, 1]} : vector<8x512xf32> to vector<8x128xf32>
    %161 = math.tanh %160 : vector<8x128xf32>
    %162 = arith.mulf %151, %131 : vector<8x128xf32>
    %163 = arith.mulf %143, %161 : vector<8x128xf32>
    %164 = arith.addf %162, %163 : vector<8x128xf32>
    %165 = math.tanh %164 : vector<8x128xf32>
    %166 = arith.mulf %159, %165 : vector<8x128xf32>
    %c0_87 = arith.constant 0 : index
    %c0_88 = arith.constant 0 : index
    %167 = vector.load %arg8[%c0_87, %c0_88] : memref<8x128xf32, #tpu.memory_space<vmem>>, vector<8x128xf32>
    tpu.vector_store %arg8[%c0_87, %c0_88], %166 {strides = array<i32>} : memref<8x128xf32, #tpu.memory_space<vmem>>, vector<8x128xf32>,
    %c0_89 = arith.constant 0 : index
    %c0_90 = arith.constant 0 : index
    %168 = vector.load %arg9[%c0_89, %c0_90] : memref<8x128xf32, #tpu.memory_space<vmem>>, vector<8x128xf32>
    tpu.vector_store %arg9[%c0_89, %c0_90], %164 {strides = array<i32>} : memref<8x128xf32, #tpu.memory_space<vmem>>, vector<8x128xf32>,
    %c0_91 = arith.constant 0 : index
    %c3_92 = arith.constant 3 : index
    %c0_93 = arith.constant 0 : index
    %169 = vector.load %arg6[%c0_91, %c3_92, %c0_93] : memref<8x8x128xf32, #tpu.memory_space<vmem>>, vector<8x1x128xf32>
    %170 = vector.shape_cast %169 : vector<8x1x128xf32> to vector<8x128xf32>
    %171 = vector.shape_cast %166 : vector<8x128xf32> to vector<8x1x128xf32>
    tpu.vector_store %arg6[%c0_91, %c3_92, %c0_93], %171 {strides = array<i32>} : memref<8x8x128xf32, #tpu.memory_space<vmem>>, vector<8x1x128xf32>,
    %c0_94 = arith.constant 0 : index
    %c0_95 = arith.constant 0 : index
    %172 = vector.load %arg8[%c0_94, %c0_95] : memref<8x128xf32, #tpu.memory_space<vmem>>, vector<8x128xf32>
    %c0_96 = arith.constant 0 : index
    %c0_97 = arith.constant 0 : index
    %173 = vector.load %arg9[%c0_96, %c0_97] : memref<8x128xf32, #tpu.memory_space<vmem>>, vector<8x128xf32>
    %c4 = arith.constant 4 : index
    %c0_98 = arith.constant 0 : index
    %c0_99 = arith.constant 0 : index
    %174 = vector.load %arg2[%c4, %c0_98, %c0_99] : memref<8x8x512xf32, #tpu.memory_space<vmem>>, vector<1x8x512xf32>
    %175 = vector.shape_cast %174 : vector<1x8x512xf32> to vector<8x512xf32>
    %cst_100 = arith.constant dense<0.000000e+00> : vector<8x512xf32>
    %176 = tpu.matmul %172, %3, %cst_100 {dimension_numbers = #tpu.dot_dimension_numbers<[1], [0], [0], [1], [0, 0, 1, 1], [], []>} : vector<8x128xf32>, vector<128x512xf32>, vector<8x512xf32> -> vector<8x512xf32>
    %177 = arith.addf %175, %176 : vector<8x512xf32>
    %178 = vector.extract_strided_slice %177 {offsets = [0, 0], sizes = [8, 128], strides = [1, 1]} : vector<8x512xf32> to vector<8x128xf32>
    %cst_101 = arith.constant 5.000000e-01 : f32
    %179 = vector.broadcast %cst_101 : f32 to vector<8x128xf32>
    %180 = arith.mulf %179, %178 : vector<8x128xf32>
    %181 = math.tanh %180 : vector<8x128xf32>
    %cst_102 = arith.constant 5.000000e-01 : f32
    %182 = vector.broadcast %cst_102 : f32 to vector<8x128xf32>
    %183 = arith.mulf %182, %181 : vector<8x128xf32>
    %cst_103 = arith.constant 5.000000e-01 : f32
    %184 = vector.broadcast %cst_103 : f32 to vector<8x128xf32>
    %185 = arith.addf %183, %184 : vector<8x128xf32>
    %186 = vector.extract_strided_slice %177 {offsets = [0, 128], sizes = [8, 128], strides = [1, 1]} : vector<8x512xf32> to vector<8x128xf32>
    %cst_104 = arith.constant 5.000000e-01 : f32
    %187 = vector.broadcast %cst_104 : f32 to vector<8x128xf32>
    %188 = arith.mulf %187, %186 : vector<8x128xf32>
    %189 = math.tanh %188 : vector<8x128xf32>
    %cst_105 = arith.constant 5.000000e-01 : f32
    %190 = vector.broadcast %cst_105 : f32 to vector<8x128xf32>
    %191 = arith.mulf %190, %189 : vector<8x128xf32>
    %cst_106 = arith.constant 5.000000e-01 : f32
    %192 = vector.broadcast %cst_106 : f32 to vector<8x128xf32>
    %193 = arith.addf %191, %192 : vector<8x128xf32>
    %194 = vector.extract_strided_slice %177 {offsets = [0, 256], sizes = [8, 128], strides = [1, 1]} : vector<8x512xf32> to vector<8x128xf32>
    %cst_107 = arith.constant 5.000000e-01 : f32
    %195 = vector.broadcast %cst_107 : f32 to vector<8x128xf32>
    %196 = arith.mulf %195, %194 : vector<8x128xf32>
    %197 = math.tanh %196 : vector<8x128xf32>
    %cst_108 = arith.constant 5.000000e-01 : f32
    %198 = vector.broadcast %cst_108 : f32 to vector<8x128xf32>
    %199 = arith.mulf %198, %197 : vector<8x128xf32>
    %cst_109 = arith.constant 5.000000e-01 : f32
    %200 = vector.broadcast %cst_109 : f32 to vector<8x128xf32>
    %201 = arith.addf %199, %200 : vector<8x128xf32>
    %202 = vector.extract_strided_slice %177 {offsets = [0, 384], sizes = [8, 128], strides = [1, 1]} : vector<8x512xf32> to vector<8x128xf32>
    %203 = math.tanh %202 : vector<8x128xf32>
    %204 = arith.mulf %193, %173 : vector<8x128xf32>
    %205 = arith.mulf %185, %203 : vector<8x128xf32>
    %206 = arith.addf %204, %205 : vector<8x128xf32>
    %207 = math.tanh %206 : vector<8x128xf32>
    %208 = arith.mulf %201, %207 : vector<8x128xf32>
    %c0_110 = arith.constant 0 : index
    %c0_111 = arith.constant 0 : index
    %209 = vector.load %arg8[%c0_110, %c0_111] : memref<8x128xf32, #tpu.memory_space<vmem>>, vector<8x128xf32>
    tpu.vector_store %arg8[%c0_110, %c0_111], %208 {strides = array<i32>} : memref<8x128xf32, #tpu.memory_space<vmem>>, vector<8x128xf32>,
    %c0_112 = arith.constant 0 : index
    %c0_113 = arith.constant 0 : index
    %210 = vector.load %arg9[%c0_112, %c0_113] : memref<8x128xf32, #tpu.memory_space<vmem>>, vector<8x128xf32>
    tpu.vector_store %arg9[%c0_112, %c0_113], %206 {strides = array<i32>} : memref<8x128xf32, #tpu.memory_space<vmem>>, vector<8x128xf32>,
    %c0_114 = arith.constant 0 : index
    %c4_115 = arith.constant 4 : index
    %c0_116 = arith.constant 0 : index
    %211 = vector.load %arg6[%c0_114, %c4_115, %c0_116] : memref<8x8x128xf32, #tpu.memory_space<vmem>>, vector<8x1x128xf32>
    %212 = vector.shape_cast %211 : vector<8x1x128xf32> to vector<8x128xf32>
    %213 = vector.shape_cast %208 : vector<8x128xf32> to vector<8x1x128xf32>
    tpu.vector_store %arg6[%c0_114, %c4_115, %c0_116], %213 {strides = array<i32>} : memref<8x8x128xf32, #tpu.memory_space<vmem>>, vector<8x1x128xf32>,
    %c0_117 = arith.constant 0 : index
    %c0_118 = arith.constant 0 : index
    %214 = vector.load %arg8[%c0_117, %c0_118] : memref<8x128xf32, #tpu.memory_space<vmem>>, vector<8x128xf32>
    %c0_119 = arith.constant 0 : index
    %c0_120 = arith.constant 0 : index
    %215 = vector.load %arg9[%c0_119, %c0_120] : memref<8x128xf32, #tpu.memory_space<vmem>>, vector<8x128xf32>
    %c5 = arith.constant 5 : index
    %c0_121 = arith.constant 0 : index
    %c0_122 = arith.constant 0 : index
    %216 = vector.load %arg2[%c5, %c0_121, %c0_122] : memref<8x8x512xf32, #tpu.memory_space<vmem>>, vector<1x8x512xf32>
    %217 = vector.shape_cast %216 : vector<1x8x512xf32> to vector<8x512xf32>
    %cst_123 = arith.constant dense<0.000000e+00> : vector<8x512xf32>
    %218 = tpu.matmul %214, %3, %cst_123 {dimension_numbers = #tpu.dot_dimension_numbers<[1], [0], [0], [1], [0, 0, 1, 1], [], []>} : vector<8x128xf32>, vector<128x512xf32>, vector<8x512xf32> -> vector<8x512xf32>
    %219 = arith.addf %217, %218 : vector<8x512xf32>
    %220 = vector.extract_strided_slice %219 {offsets = [0, 0], sizes = [8, 128], strides = [1, 1]} : vector<8x512xf32> to vector<8x128xf32>
    %cst_124 = arith.constant 5.000000e-01 : f32
    %221 = vector.broadcast %cst_124 : f32 to vector<8x128xf32>
    %222 = arith.mulf %221, %220 : vector<8x128xf32>
    %223 = math.tanh %222 : vector<8x128xf32>
    %cst_125 = arith.constant 5.000000e-01 : f32
    %224 = vector.broadcast %cst_125 : f32 to vector<8x128xf32>
    %225 = arith.mulf %224, %223 : vector<8x128xf32>
    %cst_126 = arith.constant 5.000000e-01 : f32
    %226 = vector.broadcast %cst_126 : f32 to vector<8x128xf32>
    %227 = arith.addf %225, %226 : vector<8x128xf32>
    %228 = vector.extract_strided_slice %219 {offsets = [0, 128], sizes = [8, 128], strides = [1, 1]} : vector<8x512xf32> to vector<8x128xf32>
    %cst_127 = arith.constant 5.000000e-01 : f32
    %229 = vector.broadcast %cst_127 : f32 to vector<8x128xf32>
    %230 = arith.mulf %229, %228 : vector<8x128xf32>
    %231 = math.tanh %230 : vector<8x128xf32>
    %cst_128 = arith.constant 5.000000e-01 : f32
    %232 = vector.broadcast %cst_128 : f32 to vector<8x128xf32>
    %233 = arith.mulf %232, %231 : vector<8x128xf32>
    %cst_129 = arith.constant 5.000000e-01 : f32
    %234 = vector.broadcast %cst_129 : f32 to vector<8x128xf32>
    %235 = arith.addf %233, %234 : vector<8x128xf32>
    %236 = vector.extract_strided_slice %219 {offsets = [0, 256], sizes = [8, 128], strides = [1, 1]} : vector<8x512xf32> to vector<8x128xf32>
    %cst_130 = arith.constant 5.000000e-01 : f32
    %237 = vector.broadcast %cst_130 : f32 to vector<8x128xf32>
    %238 = arith.mulf %237, %236 : vector<8x128xf32>
    %239 = math.tanh %238 : vector<8x128xf32>
    %cst_131 = arith.constant 5.000000e-01 : f32
    %240 = vector.broadcast %cst_131 : f32 to vector<8x128xf32>
    %241 = arith.mulf %240, %239 : vector<8x128xf32>
    %cst_132 = arith.constant 5.000000e-01 : f32
    %242 = vector.broadcast %cst_132 : f32 to vector<8x128xf32>
    %243 = arith.addf %241, %242 : vector<8x128xf32>
    %244 = vector.extract_strided_slice %219 {offsets = [0, 384], sizes = [8, 128], strides = [1, 1]} : vector<8x512xf32> to vector<8x128xf32>
    %245 = math.tanh %244 : vector<8x128xf32>
    %246 = arith.mulf %235, %215 : vector<8x128xf32>
    %247 = arith.mulf %227, %245 : vector<8x128xf32>
    %248 = arith.addf %246, %247 : vector<8x128xf32>
    %249 = math.tanh %248 : vector<8x128xf32>
    %250 = arith.mulf %243, %249 : vector<8x128xf32>
    %c0_133 = arith.constant 0 : index
    %c0_134 = arith.constant 0 : index
    %251 = vector.load %arg8[%c0_133, %c0_134] : memref<8x128xf32, #tpu.memory_space<vmem>>, vector<8x128xf32>
    tpu.vector_store %arg8[%c0_133, %c0_134], %250 {strides = array<i32>} : memref<8x128xf32, #tpu.memory_space<vmem>>, vector<8x128xf32>,
    %c0_135 = arith.constant 0 : index
    %c0_136 = arith.constant 0 : index
    %252 = vector.load %arg9[%c0_135, %c0_136] : memref<8x128xf32, #tpu.memory_space<vmem>>, vector<8x128xf32>
    tpu.vector_store %arg9[%c0_135, %c0_136], %248 {strides = array<i32>} : memref<8x128xf32, #tpu.memory_space<vmem>>, vector<8x128xf32>,
    %c0_137 = arith.constant 0 : index
    %c5_138 = arith.constant 5 : index
    %c0_139 = arith.constant 0 : index
    %253 = vector.load %arg6[%c0_137, %c5_138, %c0_139] : memref<8x8x128xf32, #tpu.memory_space<vmem>>, vector<8x1x128xf32>
    %254 = vector.shape_cast %253 : vector<8x1x128xf32> to vector<8x128xf32>
    %255 = vector.shape_cast %250 : vector<8x128xf32> to vector<8x1x128xf32>
    tpu.vector_store %arg6[%c0_137, %c5_138, %c0_139], %255 {strides = array<i32>} : memref<8x8x128xf32, #tpu.memory_space<vmem>>, vector<8x1x128xf32>,
    %c0_140 = arith.constant 0 : index
    %c0_141 = arith.constant 0 : index
    %256 = vector.load %arg8[%c0_140, %c0_141] : memref<8x128xf32, #tpu.memory_space<vmem>>, vector<8x128xf32>
    %c0_142 = arith.constant 0 : index
    %c0_143 = arith.constant 0 : index
    %257 = vector.load %arg9[%c0_142, %c0_143] : memref<8x128xf32, #tpu.memory_space<vmem>>, vector<8x128xf32>
    %c6 = arith.constant 6 : index
    %c0_144 = arith.constant 0 : index
    %c0_145 = arith.constant 0 : index
    %258 = vector.load %arg2[%c6, %c0_144, %c0_145] : memref<8x8x512xf32, #tpu.memory_space<vmem>>, vector<1x8x512xf32>
    %259 = vector.shape_cast %258 : vector<1x8x512xf32> to vector<8x512xf32>
    %cst_146 = arith.constant dense<0.000000e+00> : vector<8x512xf32>
    %260 = tpu.matmul %256, %3, %cst_146 {dimension_numbers = #tpu.dot_dimension_numbers<[1], [0], [0], [1], [0, 0, 1, 1], [], []>} : vector<8x128xf32>, vector<128x512xf32>, vector<8x512xf32> -> vector<8x512xf32>
    %261 = arith.addf %259, %260 : vector<8x512xf32>
    %262 = vector.extract_strided_slice %261 {offsets = [0, 0], sizes = [8, 128], strides = [1, 1]} : vector<8x512xf32> to vector<8x128xf32>
    %cst_147 = arith.constant 5.000000e-01 : f32
    %263 = vector.broadcast %cst_147 : f32 to vector<8x128xf32>
    %264 = arith.mulf %263, %262 : vector<8x128xf32>
    %265 = math.tanh %264 : vector<8x128xf32>
    %cst_148 = arith.constant 5.000000e-01 : f32
    %266 = vector.broadcast %cst_148 : f32 to vector<8x128xf32>
    %267 = arith.mulf %266, %265 : vector<8x128xf32>
    %cst_149 = arith.constant 5.000000e-01 : f32
    %268 = vector.broadcast %cst_149 : f32 to vector<8x128xf32>
    %269 = arith.addf %267, %268 : vector<8x128xf32>
    %270 = vector.extract_strided_slice %261 {offsets = [0, 128], sizes = [8, 128], strides = [1, 1]} : vector<8x512xf32> to vector<8x128xf32>
    %cst_150 = arith.constant 5.000000e-01 : f32
    %271 = vector.broadcast %cst_150 : f32 to vector<8x128xf32>
    %272 = arith.mulf %271, %270 : vector<8x128xf32>
    %273 = math.tanh %272 : vector<8x128xf32>
    %cst_151 = arith.constant 5.000000e-01 : f32
    %274 = vector.broadcast %cst_151 : f32 to vector<8x128xf32>
    %275 = arith.mulf %274, %273 : vector<8x128xf32>
    %cst_152 = arith.constant 5.000000e-01 : f32
    %276 = vector.broadcast %cst_152 : f32 to vector<8x128xf32>
    %277 = arith.addf %275, %276 : vector<8x128xf32>
    %278 = vector.extract_strided_slice %261 {offsets = [0, 256], sizes = [8, 128], strides = [1, 1]} : vector<8x512xf32> to vector<8x128xf32>
    %cst_153 = arith.constant 5.000000e-01 : f32
    %279 = vector.broadcast %cst_153 : f32 to vector<8x128xf32>
    %280 = arith.mulf %279, %278 : vector<8x128xf32>
    %281 = math.tanh %280 : vector<8x128xf32>
    %cst_154 = arith.constant 5.000000e-01 : f32
    %282 = vector.broadcast %cst_154 : f32 to vector<8x128xf32>
    %283 = arith.mulf %282, %281 : vector<8x128xf32>
    %cst_155 = arith.constant 5.000000e-01 : f32
    %284 = vector.broadcast %cst_155 : f32 to vector<8x128xf32>
    %285 = arith.addf %283, %284 : vector<8x128xf32>
    %286 = vector.extract_strided_slice %261 {offsets = [0, 384], sizes = [8, 128], strides = [1, 1]} : vector<8x512xf32> to vector<8x128xf32>
    %287 = math.tanh %286 : vector<8x128xf32>
    %288 = arith.mulf %277, %257 : vector<8x128xf32>
    %289 = arith.mulf %269, %287 : vector<8x128xf32>
    %290 = arith.addf %288, %289 : vector<8x128xf32>
    %291 = math.tanh %290 : vector<8x128xf32>
    %292 = arith.mulf %285, %291 : vector<8x128xf32>
    %c0_156 = arith.constant 0 : index
    %c0_157 = arith.constant 0 : index
    %293 = vector.load %arg8[%c0_156, %c0_157] : memref<8x128xf32, #tpu.memory_space<vmem>>, vector<8x128xf32>
    tpu.vector_store %arg8[%c0_156, %c0_157], %292 {strides = array<i32>} : memref<8x128xf32, #tpu.memory_space<vmem>>, vector<8x128xf32>,
    %c0_158 = arith.constant 0 : index
    %c0_159 = arith.constant 0 : index
    %294 = vector.load %arg9[%c0_158, %c0_159] : memref<8x128xf32, #tpu.memory_space<vmem>>, vector<8x128xf32>
    tpu.vector_store %arg9[%c0_158, %c0_159], %290 {strides = array<i32>} : memref<8x128xf32, #tpu.memory_space<vmem>>, vector<8x128xf32>,
    %c0_160 = arith.constant 0 : index
    %c6_161 = arith.constant 6 : index
    %c0_162 = arith.constant 0 : index
    %295 = vector.load %arg6[%c0_160, %c6_161, %c0_162] : memref<8x8x128xf32, #tpu.memory_space<vmem>>, vector<8x1x128xf32>
    %296 = vector.shape_cast %295 : vector<8x1x128xf32> to vector<8x128xf32>
    %297 = vector.shape_cast %292 : vector<8x128xf32> to vector<8x1x128xf32>
    tpu.vector_store %arg6[%c0_160, %c6_161, %c0_162], %297 {strides = array<i32>} : memref<8x8x128xf32, #tpu.memory_space<vmem>>, vector<8x1x128xf32>,
    %c0_163 = arith.constant 0 : index
    %c0_164 = arith.constant 0 : index
    %298 = vector.load %arg8[%c0_163, %c0_164] : memref<8x128xf32, #tpu.memory_space<vmem>>, vector<8x128xf32>
    %c0_165 = arith.constant 0 : index
    %c0_166 = arith.constant 0 : index
    %299 = vector.load %arg9[%c0_165, %c0_166] : memref<8x128xf32, #tpu.memory_space<vmem>>, vector<8x128xf32>
    %c7 = arith.constant 7 : index
    %c0_167 = arith.constant 0 : index
    %c0_168 = arith.constant 0 : index
    %300 = vector.load %arg2[%c7, %c0_167, %c0_168] : memref<8x8x512xf32, #tpu.memory_space<vmem>>, vector<1x8x512xf32>
    %301 = vector.shape_cast %300 : vector<1x8x512xf32> to vector<8x512xf32>
    %cst_169 = arith.constant dense<0.000000e+00> : vector<8x512xf32>
    %302 = tpu.matmul %298, %3, %cst_169 {dimension_numbers = #tpu.dot_dimension_numbers<[1], [0], [0], [1], [0, 0, 1, 1], [], []>} : vector<8x128xf32>, vector<128x512xf32>, vector<8x512xf32> -> vector<8x512xf32>
    %303 = arith.addf %301, %302 : vector<8x512xf32>
    %304 = vector.extract_strided_slice %303 {offsets = [0, 0], sizes = [8, 128], strides = [1, 1]} : vector<8x512xf32> to vector<8x128xf32>
    %cst_170 = arith.constant 5.000000e-01 : f32
    %305 = vector.broadcast %cst_170 : f32 to vector<8x128xf32>
    %306 = arith.mulf %305, %304 : vector<8x128xf32>
    %307 = math.tanh %306 : vector<8x128xf32>
    %cst_171 = arith.constant 5.000000e-01 : f32
    %308 = vector.broadcast %cst_171 : f32 to vector<8x128xf32>
    %309 = arith.mulf %308, %307 : vector<8x128xf32>
    %cst_172 = arith.constant 5.000000e-01 : f32
    %310 = vector.broadcast %cst_172 : f32 to vector<8x128xf32>
    %311 = arith.addf %309, %310 : vector<8x128xf32>
    %312 = vector.extract_strided_slice %303 {offsets = [0, 128], sizes = [8, 128], strides = [1, 1]} : vector<8x512xf32> to vector<8x128xf32>
    %cst_173 = arith.constant 5.000000e-01 : f32
    %313 = vector.broadcast %cst_173 : f32 to vector<8x128xf32>
    %314 = arith.mulf %313, %312 : vector<8x128xf32>
    %315 = math.tanh %314 : vector<8x128xf32>
    %cst_174 = arith.constant 5.000000e-01 : f32
    %316 = vector.broadcast %cst_174 : f32 to vector<8x128xf32>
    %317 = arith.mulf %316, %315 : vector<8x128xf32>
    %cst_175 = arith.constant 5.000000e-01 : f32
    %318 = vector.broadcast %cst_175 : f32 to vector<8x128xf32>
    %319 = arith.addf %317, %318 : vector<8x128xf32>
    %320 = vector.extract_strided_slice %303 {offsets = [0, 256], sizes = [8, 128], strides = [1, 1]} : vector<8x512xf32> to vector<8x128xf32>
    %cst_176 = arith.constant 5.000000e-01 : f32
    %321 = vector.broadcast %cst_176 : f32 to vector<8x128xf32>
    %322 = arith.mulf %321, %320 : vector<8x128xf32>
    %323 = math.tanh %322 : vector<8x128xf32>
    %cst_177 = arith.constant 5.000000e-01 : f32
    %324 = vector.broadcast %cst_177 : f32 to vector<8x128xf32>
    %325 = arith.mulf %324, %323 : vector<8x128xf32>
    %cst_178 = arith.constant 5.000000e-01 : f32
    %326 = vector.broadcast %cst_178 : f32 to vector<8x128xf32>
    %327 = arith.addf %325, %326 : vector<8x128xf32>
    %328 = vector.extract_strided_slice %303 {offsets = [0, 384], sizes = [8, 128], strides = [1, 1]} : vector<8x512xf32> to vector<8x128xf32>
    %329 = math.tanh %328 : vector<8x128xf32>
    %330 = arith.mulf %319, %299 : vector<8x128xf32>
    %331 = arith.mulf %311, %329 : vector<8x128xf32>
    %332 = arith.addf %330, %331 : vector<8x128xf32>
    %333 = math.tanh %332 : vector<8x128xf32>
    %334 = arith.mulf %327, %333 : vector<8x128xf32>
    %c0_179 = arith.constant 0 : index
    %c0_180 = arith.constant 0 : index
    %335 = vector.load %arg8[%c0_179, %c0_180] : memref<8x128xf32, #tpu.memory_space<vmem>>, vector<8x128xf32>
    tpu.vector_store %arg8[%c0_179, %c0_180], %334 {strides = array<i32>} : memref<8x128xf32, #tpu.memory_space<vmem>>, vector<8x128xf32>,
    %c0_181 = arith.constant 0 : index
    %c0_182 = arith.constant 0 : index
    %336 = vector.load %arg9[%c0_181, %c0_182] : memref<8x128xf32, #tpu.memory_space<vmem>>, vector<8x128xf32>
    tpu.vector_store %arg9[%c0_181, %c0_182], %332 {strides = array<i32>} : memref<8x128xf32, #tpu.memory_space<vmem>>, vector<8x128xf32>,
    %c0_183 = arith.constant 0 : index
    %c7_184 = arith.constant 7 : index
    %c0_185 = arith.constant 0 : index
    %337 = vector.load %arg6[%c0_183, %c7_184, %c0_185] : memref<8x8x128xf32, #tpu.memory_space<vmem>>, vector<8x1x128xf32>
    %338 = vector.shape_cast %337 : vector<8x1x128xf32> to vector<8x128xf32>
    %339 = vector.shape_cast %334 : vector<8x128xf32> to vector<8x1x128xf32>
    tpu.vector_store %arg6[%c0_183, %c7_184, %c0_185], %339 {strides = array<i32>} : memref<8x8x128xf32, #tpu.memory_space<vmem>>, vector<8x1x128xf32>,
    %c0_i32_186 = arith.constant 0 : i32
    %340 = arith.cmpi eq, %arg1, %c0_i32_186 : i32
    %341 = arith.extui %340 : i1 to i32
    %c0_i32_187 = arith.constant 0 : i32
    %342 = arith.cmpi ne, %341, %c0_i32_187 : i32
    scf.if %342 {
      %c0_188 = arith.constant 0 : index
      %c0_189 = arith.constant 0 : index
      %343 = vector.load %arg9[%c0_188, %c0_189] : memref<8x128xf32, #tpu.memory_space<vmem>>, vector<8x128xf32>
      %c0_190 = arith.constant 0 : index
      %c0_191 = arith.constant 0 : index
      %344 = vector.load %arg7[%c0_190, %c0_191] : memref<8x128xf32, #tpu.memory_space<vmem>>, vector<8x128xf32>
      tpu.vector_store %arg7[%c0_190, %c0_191], %343 {strides = array<i32>} : memref<8x128xf32, #tpu.memory_space<vmem>>, vector<8x128xf32>,
    } else {
    }
    return
  }
  func.func @transform_0(%arg0: i32, %arg1: i32) -> (i32, i32, i32) {
    %c0_i32 = arith.constant 0 : i32
    %c0_i32_0 = arith.constant 0 : i32
    return %arg1, %arg0, %c0_i32 : i32, i32, i32
  }
  func.func @transform_1(%arg0: i32, %arg1: i32) -> (i32, i32) {
    %c0_i32 = arith.constant 0 : i32
    %c0_i32_0 = arith.constant 0 : i32
    return %arg0, %c0_i32 : i32, i32
  }
  func.func @transform_2(%arg0: i32, %arg1: i32) -> (i32, i32) {
    %c0_i32 = arith.constant 0 : i32
    %c0_i32_0 = arith.constant 0 : i32
    return %arg0, %c0_i32 : i32, i32
  }
  func.func @transform_3(%arg0: i32, %arg1: i32) -> (i32, i32) {
    %c0_i32 = arith.constant 0 : i32
    %c0_i32_0 = arith.constant 0 : i32
    %c0_i32_1 = arith.constant 0 : i32
    return %c0_i32, %c0_i32_0 : i32, i32
  }
  func.func @transform_4(%arg0: i32, %arg1: i32) -> (i32, i32, i32) {
    %c0_i32 = arith.constant 0 : i32
    %c0_i32_0 = arith.constant 0 : i32
    return %arg0, %arg1, %c0_i32 : i32, i32, i32
  }
  func.func @transform_5(%arg0: i32, %arg1: i32) -> (i32, i32) {
    %c0_i32 = arith.constant 0 : i32
    %c0_i32_0 = arith.constant 0 : i32
    return %arg0, %c0_i32 : i32, i32
  }
}

</mosaic_0001>

<bundles_post_ra>
// kernel: tpu_custom_call.1
= control target key start
LH: loop header
LB: loop body
LE: loop exit
PB: predicated region body
PF: predicated region fallthrough
CT: control target
= control target key end

     0   :  { %11 = vsyncpa [#allocation5], 0  ;;  %s3415_s0 = inlined_call_operand.hbm [shape: f32[8,8,512], index: 0, kind: input, shape index: {}]   ;;  %s3416_s1 = inlined_call_operand.hbm [shape: f32[8,128], index: 1, kind: input, shape index: {}]   ;;  %s3417_s2 = inlined_call_operand.hbm [shape: f32[8,128], index: 2, kind: input, shape index: {}]   ;;  %s3418_s3 = inlined_call_operand.hbm [shape: f32[128,512], index: 3, kind: input, shape index: {}]   ;;  %s3419_s4 = inlined_call_operand.hbm [shape: f32[8,8,128], index: 4, kind: output, shape index: {0}]   ;;  %s3420_s5 = inlined_call_operand.hbm [shape: f32[8,128], index: 5, kind: output, shape index: {1}]  }
   0x1   :  { %12 = vsyncpa [#allocation8], 0 }
   0x2   :  { %13 = vsyncpa [#allocation11], 0 }
   0x3   :  { %14 = vsyncpa [#allocation6], 0 }
   0x4   :  { %15 = vsyncpa [#allocation14], 0  ;;  %s2871_s18 = smov [#allocation7]   ;;  %s2872_s20 = smov [#allocation4]  }
   0x5   :  { %s34_s19 = sshll.u32 %s2871_s18, 4  ;;  %s21_s21 = sshll.u32 %s2872_s20, 4  ;;  %s35_s19 = int_to_ptr.vmem [resolvable:$true] %s34_s19  ;;  %s2913_s21 = int_to_ptr.vmem [resolvable:$true] %s21_s21 }
   0x6   :  { %s2729_s24 = scalar_lea.hbm %s3416_s1, 128 }
   0x7   :  { %p2730_p0 = scmp.ne.s32.totalorder %s3416_s1, %s2729_s24  ;;  %p2733_p1 = scmp.lt.u32.totalorder %s2729_s24, %s3416_s1 }
   0x9   :  { %p2735_p2 = pnand %p2733_p1, %p2730_p0 }
   0xb   :  { %2738 = shalt.err (!%p2735_p2)
}
   0xc   :  { %s2739_s29 = scalar_lea.vmem %s35_s19, 128  ;;  %p2744_p4 = scmp.lt.s32.totalorder %s35_s19, %s35_s19 }
   0xd   :  { %p2740_p3 = scmp.ne.s32.totalorder %s35_s19, %s2739_s29  ;;  %p2745_p5 = scmp.lt.s32.totalorder %s2739_s29, %s2739_s29 }
   0xf   :  { %p2746_p6 = por %p2745_p5, %p2744_p4 }
  0x11   :  { %p2747_p7 = pnand %p2746_p6, %p2740_p3 }
  0x13   :  { %2750 = shalt.err (!%p2747_p7)
}
  0x14   :  { %37 = dma.hbm_to_vmem [thread:$0]  %s3416_s1, 128, %s35_s19, [#allocation8]  }
  0x15   :  { %s2751_s9 = scalar_lea.hbm %s3415_s0, 4096 }
  0x16   :  { %p2752_p8 = scmp.ne.s32.totalorder %s3415_s0, %s2751_s9  ;;  %p2755_p9 = scmp.lt.u32.totalorder %s2751_s9, %s3415_s0 }
  0x18   :  { %p2757_p10 = pnand %p2755_p9, %p2752_p8 }
  0x1a   :  { %2760 = shalt.err (!%p2757_p10)
}
  0x1b   :  { %s2761_s14 = scalar_lea.vmem %s2913_s21, 4096  ;;  %p2766_p12 = scmp.lt.s32.totalorder %s2913_s21, %s2913_s21 }
  0x1c   :  { %p2762_p11 = scmp.ne.s32.totalorder %s2913_s21, %s2761_s14  ;;  %p2767_p13 = scmp.lt.s32.totalorder %s2761_s14, %s2761_s14 }
  0x1e   :  { %p2768_p0 = por %p2767_p13, %p2766_p12 }
  0x20   :  { %p2769_p1 = pnand %p2768_p0, %p2762_p11 }
  0x22   :  { %2772 = shalt.err (!%p2769_p1)
}
  0x23   :  { %s2873_s1 = smov 512   ;;  %s2874_s15 = smov 32  }
  0x24   :  { %27 = dma.hbm_to_vmem [thread:$0]  %s3415_s0, 4096, %s2913_s21, [#allocation5], %s2873_s1, %s2873_s1, %s2874_s15  }
  0x25   :  { %s2875_s18 = smov [#allocation9]   ;;  %s2876_s20 = smov [#allocation10]  }
  0x26   :  { %s44_s19 = sshll.u32 %s2875_s18, 4  ;;  %s53_s22 = sshll.u32 %s2876_s20, 4  ;;  %s45_s19 = int_to_ptr.vmem [resolvable:$true] %s44_s19  ;;  %s2947_s22 = int_to_ptr.vmem [resolvable:$true] %s53_s22 }
  0x27   :  { %s2773_s25 = scalar_lea.hbm %s3417_s2, 128 }
  0x28   :  { %p2774_p2 = scmp.ne.s32.totalorder %s3417_s2, %s2773_s25  ;;  %p2777_p3 = scmp.lt.u32.totalorder %s2773_s25, %s3417_s2 }
  0x2a   :  { %p2779_p4 = pnand %p2777_p3, %p2774_p2 }
  0x2c   :  { %2782 = shalt.err (!%p2779_p4)
}
  0x2d   :  { %s2783_s0 = scalar_lea.vmem %s45_s19, 128  ;;  %p2788_p6 = scmp.lt.s32.totalorder %s45_s19, %s45_s19 }
  0x2e   :  { %p2784_p5 = scmp.ne.s32.totalorder %s45_s19, %s2783_s0  ;;  %p2789_p7 = scmp.lt.s32.totalorder %s2783_s0, %s2783_s0 }
  0x30   :  { %p2790_p8 = por %p2789_p7, %p2788_p6 }
  0x32   :  { %p2791_p9 = pnand %p2790_p8, %p2784_p5 }
  0x34   :  { %2794 = shalt.err (!%p2791_p9)
}
  0x35   :  { %47 = dma.hbm_to_vmem [thread:$0]  %s3417_s2, 128, %s45_s19, [#allocation8]  }
  0x36   :  { %s2795_s8 = scalar_lea.hbm %s3418_s3, 8192 }
  0x37   :  { %p2796_p10 = scmp.ne.s32.totalorder %s3418_s3, %s2795_s8  ;;  %p2799_p11 = scmp.lt.u32.totalorder %s2795_s8, %s3418_s3 }
  0x39   :  { %p2801_p12 = pnand %p2799_p11, %p2796_p10 }
  0x3b   :  { %2804 = shalt.err (!%p2801_p12)
}
  0x3c   :  { %s2805_s13 = scalar_lea.vmem %s2947_s22, 8192  ;;  %p2810_p0 = scmp.lt.s32.totalorder %s2947_s22, %s2947_s22 }
  0x3d   :  { %p2806_p13 = scmp.ne.s32.totalorder %s2947_s22, %s2805_s13  ;;  %p2811_p1 = scmp.lt.s32.totalorder %s2805_s13, %s2805_s13 }
  0x3f   :  { %p2812_p2 = por %p2811_p1, %p2810_p0 }
  0x41   :  { %p2813_p3 = pnand %p2812_p2, %p2806_p13 }
  0x43   :  { %2816 = shalt.err (!%p2813_p3)
}
  0x44   :  { %59 = dma.hbm_to_vmem [thread:$0]  %s3418_s3, 8192, %s2947_s22, [#allocation11], %s2873_s1, %s2873_s1, %s2874_s15  }
  0x45   :  { %2861 = dma.done.wait [#allocation5], 4096  }
  0x46   :  { %2862 = vsyncadd [#allocation5], 4294963200 }
  0x47   :  { %2863 = dma.done.wait [#allocation8], 256  }
  0x48   :  { %2864 = vsyncadd [#allocation8], 4294967040 }
  0x49   :  { %2865 = dma.done.wait [#allocation11], 8192  }
  0x4a   :  { %2866 = vsyncadd [#allocation11], 4294959104  ;;  %v2877_v0 = vmov 0.0   ;;  %v81_v1 = vld [vmem:[#allocation10 + $0x8] sm:$0xff]  ;;  %v80_v3 = vld [vmem:[#allocation10] sm:$0xff]  ;;  %s2879_s3 = smov [#allocation13]  }
  0x4b   :  { %214 = vmatprep.mubr.f32.mxu0 %v2877_v0  ;;  %285 = vmatprep.mubr.f32.mxu1 %v2877_v0  ;;  %v85_v2 = vld [vmem:[#allocation10 + $0x28] sm:$0xff]  ;;  %v84_v5 = vld [vmem:[#allocation10 + $0x20] sm:$0xff]  ;;  %v83_v12 = vld [vmem:[#allocation10 + $0x18] sm:$0xff]  ;;  %s2078_s1 = sshll.u32 %s2879_s3, 4  ;;  %s2079_s1 = int_to_ptr.vmem [resolvable:$true] %s2078_s1 }
  0x4c   :  { %v2983_v4 = vpack.c.bf16 %v85_v2, %v81_v1  ;;  %v89_v6 = vld [vmem:[#allocation10 + $0x48] sm:$0xff]  ;;  %v2985_v8 = vpack.c.bf16 %v84_v5, %v80_v3  ;;  %v88_v10 = vld [vmem:[#allocation10 + $0x40] sm:$0xff]  ;;  %v87_v13 = vld [vmem:[#allocation10 + $0x38] sm:$0xff]  ;;  %s2817_s15 = scalar_lea.vmem %s2079_s1, 128  ;;  %p2822_p5 = scmp.lt.s32.totalorder %s2079_s1, %s2079_s1 }
  0x4d   :  { %v93_v7 = vld [vmem:[#allocation10 + $0x68] sm:$0xff]  ;;  %v92_v11 = vld [vmem:[#allocation10 + $0x60] sm:$0xff]  ;;  %v82_v14 = vld [vmem:[#allocation10 + $0x10] sm:$0xff]  ;;  %v2993_v17 = vpack.c.bf16 %v87_v13, %v83_v12  ;;  %p2818_p4 = scmp.ne.s32.totalorder %s2079_s1, %s2817_s15  ;;  %p2823_p6 = scmp.lt.s32.totalorder %s2817_s15, %s2817_s15 }
  0x4e   :  { %v2987_v9 = vpack.c.bf16 %v93_v7, %v89_v6  ;;  %2126 = vmatprep.subr.bf16.mxu0 %v2983_v4  ;;  %v86_v15 = vld [vmem:[#allocation10 + $0x30] sm:$0xff]  ;;  %v2991_v16 = vpack.c.bf16 %v92_v11, %v88_v10  ;;  %v97_v19 = vld [vmem:[#allocation10 + $0x88] sm:$0xff]  ;;  %v96_v21 = vld [vmem:[#allocation10 + $0x80] sm:$0xff] }
  0x4f   :  { %2128 = vmatpush1.bf16.msra.mxu0 %v2985_v8  ;;  %v2995_v18 = vpack.c.bf16 %v86_v15, %v82_v14  ;;  %v101_v20 = vld [vmem:[#allocation10 + $0xa8] sm:$0xff]  ;;  %v100_v23 = vld [vmem:[#allocation10 + $0xa0] sm:$0xff]  ;;  %v91_v24 = vld [vmem:[#allocation10 + $0x58] sm:$0xff]  ;;  %2158 = vmatprep.subr.bf16.mxu1 %v2993_v17  ;;  %p2824_p7 = por %p2823_p6, %p2822_p5 }
  0x50   :  { %2130 = vmatprep.subr.bf16.mxu0 %v2987_v9  ;;  %v2998_v22 = vpack.c.bf16 %v101_v20, %v97_v19  ;;  %v95_v25 = vld [vmem:[#allocation10 + $0x78] sm:$0xff]  ;;  %v90_v27 = vld [vmem:[#allocation10 + $0x50] sm:$0xff]  ;;  %v105_v29 = vld [vmem:[#allocation10 + $0xc8] sm:$0xff]  ;;  %v3007_v32 = vpack.c.bf16 %v100_v23, %v96_v21 }
  0x51   :  { %v3001_v26 = vpack.c.bf16 %v95_v25, %v91_v24  ;;  %v94_v28 = vld [vmem:[#allocation10 + $0x70] sm:$0xff]  ;;  %2160 = vmatpush1.bf16.msra.mxu1 %v2995_v18  ;;  %v109_v31 = vld [vmem:[#allocation10 + $0xe8] sm:$0xff]  ;;  %v99_v33 = vld [vmem:[#allocation10 + $0x98] sm:$0xff]  ;;  %p2825_p8 = pnand %p2824_p7, %p2818_p4 }
  0x52   :  { %v3004_v30 = vpack.c.bf16 %v94_v28, %v90_v27  ;;  %v103_v34 = vld [vmem:[#allocation10 + $0xb8] sm:$0xff]  ;;  %v98_v35 = vld [vmem:[#allocation10 + $0x90] sm:$0xff]  ;;  %v3011_v36 = vpack.c.bf16 %v109_v31, %v105_v29  ;;  %v104_v37 = vld [vmem:[#allocation10 + $0xc0] sm:$0xff] }
  0x53   :  { %2132 = vmatpush1.bf16.msra.mxu0 %v2991_v16  ;;  %2162 = vmatprep.subr.bf16.mxu1 %v3001_v26  ;;  %v108_v38 = vld [vmem:[#allocation10 + $0xe0] sm:$0xff]  ;;  %v3013_v39 = vpack.c.bf16 %v103_v34, %v99_v33  ;;  %v102_v40 = vld [vmem:[#allocation10 + $0xb0] sm:$0xff]  ;;  %v113_v41 = vld [vmem:[#allocation10 + $0x108] sm:$0xff] }
  0x54   :  { %2134 = vmatprep.subr.bf16.mxu0 %v2998_v22  ;;  %v117_v42 = vld [vmem:[#allocation10 + $0x128] sm:$0xff]  ;;  %v107_v43 = vld [vmem:[#allocation10 + $0xd8] sm:$0xff]  ;;  %v3016_v44 = vpack.c.bf16 %v102_v40, %v98_v35  ;;  %v3019_v46 = vpack.c.bf16 %v108_v38, %v104_v37  ;;  %v112_v47 = vld [vmem:[#allocation10 + $0x100] sm:$0xff] }
  0x55   :  { %2164 = vmatpush1.bf16.msra.mxu1 %v3004_v30  ;;  %v111_v45 = vld [vmem:[#allocation10 + $0xf8] sm:$0xff]  ;;  %v106_v49 = vld [vmem:[#allocation10 + $0xd0] sm:$0xff]  ;;  %v3025_v51 = vpack.c.bf16 %v117_v42, %v113_v41  ;;  %v116_v52 = vld [vmem:[#allocation10 + $0x120] sm:$0xff] }
  0x56   :  { %2166 = vmatprep.subr.bf16.mxu1 %v3013_v39  ;;  %v3022_v48 = vpack.c.bf16 %v111_v45, %v107_v43  ;;  %v110_v50 = vld [vmem:[#allocation10 + $0xf0] sm:$0xff]  ;;  %v115_v53 = vld [vmem:[#allocation10 + $0x118] sm:$0xff]  ;;  %v121_v55 = vld [vmem:[#allocation10 + $0x148] sm:$0xff]  ;;  %v3031_v58 = vpack.c.bf16 %v116_v52, %v112_v47 }
  0x57   :  { %2136 = vmatpush1.bf16.msra.mxu0 %v3007_v32  ;;  %v119_v54 = vld [vmem:[#allocation10 + $0x138] sm:$0xff]  ;;  %v125_v56 = vld [vmem:[#allocation10 + $0x168] sm:$0xff]  ;;  %v3028_v57 = vpack.c.bf16 %v110_v50, %v106_v49  ;;  %v120_v59 = vld [vmem:[#allocation10 + $0x140] sm:$0xff] }
  0x58   :  { %2138 = vmatprep.subr.bf16.mxu0 %v3011_v36  ;;  %v3034_v60 = vpack.c.bf16 %v119_v54, %v115_v53  ;;  %v114_v61 = vld [vmem:[#allocation10 + $0x110] sm:$0xff]  ;;  %v3037_v63 = vpack.c.bf16 %v125_v56, %v121_v55  ;;  %v124_v1 = vld [vmem:[#allocation10 + $0x160] sm:$0xff]  ;;  %v123_v2 = vld [vmem:[#allocation10 + $0x158] sm:$0xff] }
  0x59   :  { %2168 = vmatpush1.bf16.msra.mxu1 %v3016_v44  ;;  %v118_v62 = vld [vmem:[#allocation10 + $0x130] sm:$0xff]  ;;  %v127_v3 = vld [vmem:[#allocation10 + $0x178] sm:$0xff]  ;;  %v129_v5 = vld [vmem:[#allocation10 + $0x188] sm:$0xff]  ;;  %v3043_v10 = vpack.c.bf16 %v124_v1, %v120_v59 }
  0x5a   :  { %2170 = vmatprep.subr.bf16.mxu1 %v3022_v48  ;;  %v133_v6 = vld [vmem:[#allocation10 + $0x1a8] sm:$0xff]  ;;  %v3040_v7 = vpack.c.bf16 %v118_v62, %v114_v61  ;;  %v128_v11 = vld [vmem:[#allocation10 + $0x180] sm:$0xff]  ;;  %v3046_v12 = vpack.c.bf16 %v127_v3, %v123_v2  ;;  %v122_v13 = vld [vmem:[#allocation10 + $0x150] sm:$0xff] }
  0x5b   :  { %2140 = vmatpush1.bf16.msra.mxu0 %v3019_v46  ;;  %v126_v14 = vld [vmem:[#allocation10 + $0x170] sm:$0xff]  ;;  %v3049_v15 = vpack.c.bf16 %v133_v6, %v129_v5  ;;  %v132_v19 = vld [vmem:[#allocation10 + $0x1a0] sm:$0xff]  ;;  %v131_v20 = vld [vmem:[#allocation10 + $0x198] sm:$0xff] }
  0x5c   :  { %2142 = vmatprep.subr.bf16.mxu0 %v3025_v51  ;;  %v135_v21 = vld [vmem:[#allocation10 + $0x1b8] sm:$0xff]  ;;  %v137_v23 = vld [vmem:[#allocation10 + $0x1c8] sm:$0xff]  ;;  %v3052_v25 = vpack.c.bf16 %v126_v14, %v122_v13  ;;  %v3055_v27 = vpack.c.bf16 %v132_v19, %v128_v11  ;;  %v136_v28 = vld [vmem:[#allocation10 + $0x1c0] sm:$0xff] }
  0x5d   :  { %2172 = vmatpush1.bf16.msra.mxu1 %v3028_v57  ;;  %v141_v24 = vld [vmem:[#allocation10 + $0x1e8] sm:$0xff]  ;;  %v3058_v29 = vpack.c.bf16 %v135_v21, %v131_v20  ;;  %v130_v31 = vld [vmem:[#allocation10 + $0x190] sm:$0xff]  ;;  %v140_v35 = vld [vmem:[#allocation10 + $0x1e0] sm:$0xff] }
  0x5e   :  { %2174 = vmatprep.subr.bf16.mxu1 %v3034_v60  ;;  %v134_v33 = vld [vmem:[#allocation10 + $0x1b0] sm:$0xff]  ;;  %v3061_v34 = vpack.c.bf16 %v141_v24, %v137_v23  ;;  %v139_v37 = vld [vmem:[#allocation10 + $0x1d8] sm:$0xff]  ;;  %v3067_v41 = vpack.c.bf16 %v140_v35, %v136_v28  ;;  %v149_v59 = vld [vmem:[#allocation4 + $0x18] sm:$0xff] }
  0x5f   :  { %2144 = vmatpush1.bf16.msra.mxu0 %v3031_v58  ;;  %v143_v38 = vld [vmem:[#allocation10 + $0x1f8] sm:$0xff]  ;;  %v3064_v40 = vpack.c.bf16 %v134_v33, %v130_v31  ;;  %v138_v43 = vld [vmem:[#allocation10 + $0x1d0] sm:$0xff]  ;;  %v148_v5 = vld [vmem:[#allocation4 + $0x10] sm:$0xff] }
  0x60   :  { %2146 = vmatprep.subr.bf16.mxu0 %v3037_v63  ;;  %v3070_v42 = vpack.c.bf16 %v143_v38, %v139_v37  ;;  %v142_v45 = vld [vmem:[#allocation10 + $0x1f0] sm:$0xff]  ;;  %v147_v52 = vld [vmem:[#allocation4 + $0x8] sm:$0xff]  ;;  %v2878_v37 = vmov 1966171168  }
  0x61   :  { %2176 = vmatpush1.bf16.msra.mxu1 %v3040_v7  ;;  %v3074_v47 = vpack.c.bf16 %v142_v45, %v138_v43  ;;  %v76_v49 = vld [vmem:[#allocation7] sm:$0xff]  ;;  %v78_v24 = vld [vmem:[#allocation9] sm:$0xff]  ;;  %v319_v38 = vunpack.c.l.s4 %v2878_v37  ;;  %v321_v43 = vlaneseq }
  0x62   :  { %2178 = vmatprep.subr.bf16.mxu1 %v3046_v12  ;;  %v146_v50 = vld [vmem:[#allocation4] sm:$0xff] }
  0x63   :  { %2148 = vmatpush1.bf16.msra.mxu0 %v3043_v10 }
  0x64   :  { %2150 = vmatprep.subr.bf16.mxu0 %v3049_v15 }
  0x65   :  { %2180 = vmatpush1.bf16.msra.mxu1 %v3052_v25 }
  0x66   :  { %2182 = vmatprep.subr.bf16.mxu1 %v3058_v29 }
  0x67   :  { %2152 = vmatpush1.bf16.msra.mxu0 %v3055_v27 }
  0x68   :  { %2154 = vmatprep.subr.bf16.mxu0 %v3061_v34 }
  0x69   :  { %2184 = vmatpush1.bf16.msra.mxu1 %v3064_v40 }
  0x6a   :  { %2186 = vmatprep.subr.bf16.mxu1 %v3070_v42 }
  0x6b   :  { %2156 = vmatpush1.bf16.msra.mxu0 %v3067_v41 }
  0x6c   :  { %2190 = vmatprep.subr.bf16.mxu0 %v2983_v4 }
  0x6d   :  { %2188 = vmatpush1.bf16.msra.mxu1 %v3074_v47 }
  0x6e   :  { %215 = vmatmul.mubr.f32.vlgmr.msra.gmra.mrb[0].mxu0 %v76_v49  ;;  %2222 = vmatprep.subr.bf16.mxu1 %v2993_v17 }
  0x6f   :  { %2192 = vmatpush1.bf16.msra.mxu0 %v2985_v8  ;;  %453 = vmatprep.mubr.f32.mxu0 %v2877_v0 }
  0x70   :  { %2194 = vmatprep.subr.bf16.mxu0 %v2987_v9  ;;  %286 = vmatmul.mubr.f32.vlgmr.msra.gmra.mrb[0].mxu1 %v76_v49 }
  0x71   :  { %2224 = vmatpush1.bf16.msra.mxu1 %v2995_v18  ;;  %524 = vmatprep.mubr.f32.mxu1 %v2877_v0 }
  0x72   :  { %2226 = vmatprep.subr.bf16.mxu1 %v3001_v26 }
  0x73   :  { %2196 = vmatpush1.bf16.msra.mxu0 %v2991_v16 }
  0x74   :  { %2198 = vmatprep.subr.bf16.mxu0 %v2998_v22 }
  0x75   :  { %2228 = vmatpush1.bf16.msra.mxu1 %v3004_v30 }
  0x76   :  { %2230 = vmatprep.subr.bf16.mxu1 %v3013_v39 }
  0x77   :  { %2200 = vmatpush1.bf16.msra.mxu0 %v3007_v32 }
  0x78   :  { %2202 = vmatprep.subr.bf16.mxu0 %v3011_v36 }
  0x79   :  { %2232 = vmatpush1.bf16.msra.mxu1 %v3016_v44 }
  0x7a   :  { %2234 = vmatprep.subr.bf16.mxu1 %v3022_v48 }
  0x7b   :  { %2204 = vmatpush1.bf16.msra.mxu0 %v3019_v46 }
  0x7c   :  { %2206 = vmatprep.subr.bf16.mxu0 %v3025_v51 }
  0x7d   :  { %2236 = vmatpush1.bf16.msra.mxu1 %v3028_v57 }
  0x7e   :  { %2238 = vmatprep.subr.bf16.mxu1 %v3034_v60 }
  0x7f   :  { %2208 = vmatpush1.bf16.msra.mxu0 %v3031_v58 }
  0x80   :  { %2210 = vmatprep.subr.bf16.mxu0 %v3037_v63 }
  0x81   :  { %2240 = vmatpush1.bf16.msra.mxu1 %v3040_v7 }
  0x82   :  { %2242 = vmatprep.subr.bf16.mxu1 %v3046_v12 }
  0x83   :  { %2212 = vmatpush1.bf16.msra.mxu0 %v3043_v10 }
  0x84   :  { %2214 = vmatprep.subr.bf16.mxu0 %v3049_v15 }
  0x85   :  { %2244 = vmatpush1.bf16.msra.mxu1 %v3052_v25 }
  0x86   :  { %2246 = vmatprep.subr.bf16.mxu1 %v3058_v29 }
  0x87   :  { %2216 = vmatpush1.bf16.msra.mxu0 %v3055_v27 }
  0x88   :  { %2218 = vmatprep.subr.bf16.mxu0 %v3061_v34 }
  0x89   :  { %2248 = vmatpush1.bf16.msra.mxu1 %v3064_v40 }
  0x8a   :  { %2250 = vmatprep.subr.bf16.mxu1 %v3070_v42 }
  0x8b   :  { %2220 = vmatpush1.bf16.msra.mxu0 %v3067_v41 }
  0x8c   :  { %2254 = vmatprep.subr.bf16.mxu0 %v2983_v4 }
  0x8d   :  { %2252 = vmatpush1.bf16.msra.mxu1 %v3074_v47 }
  0x8e   :  { %2286 = vmatprep.subr.bf16.mxu1 %v2993_v17 }
 0x141   :  { %v216_v53 = vpop.f32.mrb[0].mxu0 }
 0x142   :  { %v292_v54 = vadd.f32 %v216_v53, %v146_v50  ;;  %v218_v55 = vpop.f32.mrb[1].mxu0  ;;  %v320_v50 = vunpack.c.0.s8 %v319_v38 }
 0x143   :  { %v293_v56 = vadd.f32 %v218_v55, %v147_v52  ;;  %v287_v62 = vpop.f32.mrb[0].mxu1  ;;  %v322_v52 = vshrl.u32 %v321_v43, 7  ;;  %v388_v43 = vld [vmem:[#allocation4 + $0x38] sm:$0xff] }
 0x144   :  { %v296_v61 = vmul.f32 0.5, %v292_v54  ;;  %v289_v2 = vpop.f32.mrb[1].mxu1  ;;  %v294_v6 = vadd.f32 %v287_v62, %v148_v5 }
 0x145   :  { %v300_v1 = vmul.f32 0.5, %v293_v56  ;;  %v295_v3 = vadd.f32 %v289_v2, %v149_v59  ;;  %v3118_v54 = vsub.s32 %v320_v50, %v322_v52  ;;  %v387_v52 = vld [vmem:[#allocation4 + $0x30] sm:$0xff] }
 0x146   :  { %2649 = vtanh.f32 %v296_v61  ;;  %v304_v11 = vmul.f32 0.5, %v294_v6 }
 0x147   :  { %2651 = vtanh.f32 %v300_v1 }
 0x148   :  { %2653 = vtanh.f32 %v295_v3 }
 0x149   :  { %2655 = vtanh.f32 %v304_v11 }
 0x150   :  { %v2650_v13 = vpop.eup %2649 }
 0x151   :  { %v2652_v14 = vpop.eup %2651  ;;  %v298_v19 = vmul.f32 0.5, %v2650_v13 }
 0x152   :  { %v2654_v20 = vpop.eup %2653  ;;  %v302_v21 = vmul.f32 0.5, %v2652_v14 }
 0x153   :  { %v299_v23 = vadd.f32 0.5, %v298_v19  ;;  %v2656_v45 = vpop.eup %2655 }
 0x154   :  { %v303_v28 = vadd.f32 0.5, %v302_v21  ;;  %v306_v49 = vmul.f32 0.5, %v2656_v45  ;;  %v385_v21 = vld [vmem:[#allocation4 + $0x20] sm:$0xff] }
 0x155   :  { %v310_v31 = vmul.f32 %v2654_v20, %v299_v23  ;;  %v386_v23 = vld [vmem:[#allocation4 + $0x28] sm:$0xff] }
 0x156   :  { %v309_v33 = vmul.f32 %v303_v28, %v78_v24  ;;  %v307_v53 = vadd.f32 0.5, %v306_v49 }
 0x158   :  { %v3115_v35 = vadd.f32 %v310_v31, %v309_v33 }
 0x15a   :  { %2657 = vtanh.f32 %v3115_v35 }
 0x164   :  { %v2658_v55 = vpop.eup %2657 }
 0x165   :  { %v313_v56 = vmul.f32 %v2658_v55, %v307_v53 }
 0x167   :  { %v317_v59 = vcombine.high %v313_v56, %v313_v56  ;;  %v324_v61 = vrot.slane %v313_v56, %v3118_v54  ;;  %454 = vmatmul.mubr.f32.vlgmr.msra.gmra.mrb[2].mxu0 %v313_v56  ;;  %525 = vmatmul.mubr.f32.vlgmr.msra.gmra.mrb[2].mxu1 %v313_v56 }
 0x168   :  { %2256 = vmatpush1.bf16.msra.mxu0 %v2985_v8  ;;  %2288 = vmatpush1.bf16.msra.mxu1 %v2995_v18 }
 0x169   :  { %v331_v62 = vrot.slane %v317_v59, %v3118_v54  ;;  %v332_v1 = vcombine.high %v324_v61, %v324_v61  ;;  %v340_v2 = vrot.slane %v324_v61, %v3118_v54  ;;  %2093 = vst.sshfl [vmem:[#allocation12] sm:$0x1 pattern:$0x73625140] %v324_v61  ;;  %2258 = vmatprep.subr.bf16.mxu0 %v2987_v9 }
 0x16a   :  { %2290 = vmatprep.subr.bf16.mxu1 %v3001_v26  ;;  %692 = vmatprep.mubr.f32.mxu0 %v2877_v0 }
 0x16b   :  { %763 = vmatprep.mubr.f32.mxu1 %v2877_v0  ;;  %v333_v3 = vcombine.high %v331_v62, %v331_v62  ;;  %v347_v5 = vrot.slane %v331_v62, %v3118_v54  ;;  %v354_v6 = vrot.slane %v332_v1, %v3118_v54  ;;  %v362_v11 = vcombine.high %v340_v2, %v340_v2 }
 0x16c   :  { %2094 = vst.sshfl [vmem:[#allocation12 + $0x8] sm:$0x1 pattern:$0x73625140] %v332_v1  ;;  %2260 = vmatpush1.bf16.msra.mxu0 %v2991_v16  ;;  %2292 = vmatpush1.bf16.msra.mxu1 %v3004_v30 }
 0x16d   :  { %2095 = vst.sshfl [vmem:[#allocation12 + $0x20] sm:$0x1 pattern:$0x73625140] %v331_v62  ;;  %v361_v13 = vrot.slane %v333_v3, %v3118_v54  ;;  %v363_v14 = vcombine.high %v347_v5, %v347_v5  ;;  %v364_v19 = vcombine.high %v354_v6, %v354_v6  ;;  %376 = vst [vmem:[#allocation12 + $0x10] sm:$0x1] %v362_v11  ;;  %2262 = vmatprep.subr.bf16.mxu0 %v2998_v22 }
 0x16e   :  { %2096 = vst.sshfl [vmem:[#allocation12 + $0x28] sm:$0x1 pattern:$0x73625140] %v333_v3  ;;  %2294 = vmatprep.subr.bf16.mxu1 %v3013_v39 }
 0x16f   :  { %v365_v20 = vcombine.high %v361_v13, %v361_v13  ;;  %377 = vst [vmem:[#allocation12 + $0x18] sm:$0x1] %v364_v19  ;;  %380 = vst [vmem:[#allocation12 + $0x30] sm:$0x1] %v363_v14 }
 0x170   :  { %2264 = vmatpush1.bf16.msra.mxu0 %v3007_v32  ;;  %2296 = vmatpush1.bf16.msra.mxu1 %v3016_v44 }
 0x171   :  { %381 = vst [vmem:[#allocation12 + $0x38] sm:$0x1] %v365_v20  ;;  %2266 = vmatprep.subr.bf16.mxu0 %v3011_v36  ;;  %2298 = vmatprep.subr.bf16.mxu1 %v3022_v48 }
 0x174   :  { %2268 = vmatpush1.bf16.msra.mxu0 %v3019_v46  ;;  %2300 = vmatpush1.bf16.msra.mxu1 %v3028_v57 }
 0x175   :  { %2270 = vmatprep.subr.bf16.mxu0 %v3025_v51  ;;  %2302 = vmatprep.subr.bf16.mxu1 %v3034_v60 }
 0x178   :  { %2272 = vmatpush1.bf16.msra.mxu0 %v3031_v58  ;;  %2304 = vmatpush1.bf16.msra.mxu1 %v3040_v7 }
 0x179   :  { %2274 = vmatprep.subr.bf16.mxu0 %v3037_v63  ;;  %2306 = vmatprep.subr.bf16.mxu1 %v3046_v12 }
 0x17c   :  { %2276 = vmatpush1.bf16.msra.mxu0 %v3043_v10  ;;  %2308 = vmatpush1.bf16.msra.mxu1 %v3052_v25 }
 0x17d   :  { %2278 = vmatprep.subr.bf16.mxu0 %v3049_v15  ;;  %2310 = vmatprep.subr.bf16.mxu1 %v3058_v29 }
 0x180   :  { %2280 = vmatpush1.bf16.msra.mxu0 %v3055_v27  ;;  %2312 = vmatpush1.bf16.msra.mxu1 %v3064_v40 }
 0x181   :  { %2282 = vmatprep.subr.bf16.mxu0 %v3061_v34  ;;  %2314 = vmatprep.subr.bf16.mxu1 %v3070_v42 }
 0x184   :  { %2284 = vmatpush1.bf16.msra.mxu0 %v3067_v41  ;;  %2316 = vmatpush1.bf16.msra.mxu1 %v3074_v47 }
 0x185   :  { %2318 = vmatprep.subr.bf16.mxu0 %v2983_v4  ;;  %2350 = vmatprep.subr.bf16.mxu1 %v2993_v17 }
 0x23a   :  { %v455_v24 = vpop.f32.mrb[2].mxu0  ;;  %v526_v28 = vpop.f32.mrb[2].mxu1 }
 0x23b   :  { %v531_v31 = vadd.f32 %v455_v24, %v385_v21  ;;  %v457_v33 = vpop.f32.mrb[3].mxu0  ;;  %v528_v37 = vpop.f32.mrb[3].mxu1  ;;  %v533_v53 = vadd.f32 %v526_v28, %v387_v52 }
 0x23c   :  { %v532_v38 = vadd.f32 %v457_v33, %v386_v23  ;;  %v534_v50 = vadd.f32 %v528_v37, %v388_v43 }
 0x23d   :  { %v535_v45 = vmul.f32 0.5, %v531_v31  ;;  %v543_v55 = vmul.f32 0.5, %v533_v53  ;;  %v624_v53 = vld [vmem:[#allocation4 + $0x40] sm:$0xff] }
 0x23e   :  { %v539_v49 = vmul.f32 0.5, %v532_v38 }
 0x23f   :  { %2659 = vtanh.f32 %v535_v45 }
 0x240   :  { %2661 = vtanh.f32 %v539_v49 }
 0x241   :  { %2663 = vtanh.f32 %v534_v50 }
 0x242   :  { %2665 = vtanh.f32 %v543_v55  ;;  %v625_v55 = vld [vmem:[#allocation4 + $0x48] sm:$0xff] }
 0x249   :  { %v2660_v56 = vpop.eup %2659 }
 0x24a   :  { %v537_v59 = vmul.f32 0.5, %v2660_v56  ;;  %v2662_v61 = vpop.eup %2661 }
 0x24b   :  { %v541_v1 = vmul.f32 0.5, %v2662_v61  ;;  %v2664_v2 = vpop.eup %2663 }
 0x24c   :  { %v538_v62 = vadd.f32 0.5, %v537_v59  ;;  %v2666_v13 = vpop.eup %2665 }
 0x24d   :  { %v542_v3 = vadd.f32 0.5, %v541_v1  ;;  %v545_v14 = vmul.f32 0.5, %v2666_v13 }
 0x24e   :  { %v549_v5 = vmul.f32 %v2664_v2, %v538_v62 }
 0x24f   :  { %v548_v6 = vmul.f32 %v542_v3, %v3115_v35  ;;  %v546_v19 = vadd.f32 0.5, %v545_v14  ;;  %v627_v3 = vld [vmem:[#allocation4 + $0x58] sm:$0xff]  ;;  %v626_v14 = vld [vmem:[#allocation4 + $0x50] sm:$0xff] }
 0x251   :  { %v3161_v11 = vadd.f32 %v549_v5, %v548_v6 }
 0x253   :  { %2667 = vtanh.f32 %v3161_v11 }
 0x25d   :  { %v2668_v20 = vpop.eup %2667 }
 0x25e   :  { %v552_v21 = vmul.f32 %v2668_v20, %v546_v19 }
 0x260   :  { %v556_v23 = vcombine.high %v552_v21, %v552_v21  ;;  %v563_v24 = vrot.slane %v552_v21, %v3118_v54  ;;  %693 = vmatmul.mubr.f32.vlgmr.msra.gmra.mrb[4].mxu0 %v552_v21  ;;  %764 = vmatmul.mubr.f32.vlgmr.msra.gmra.mrb[4].mxu1 %v552_v21 }
 0x261   :  { %2320 = vmatpush1.bf16.msra.mxu0 %v2985_v8  ;;  %2352 = vmatpush1.bf16.msra.mxu1 %v2995_v18 }
 0x262   :  { %v570_v35 = vrot.slane %v556_v23, %v3118_v54  ;;  %v571_v28 = vcombine.high %v563_v24, %v563_v24  ;;  %v579_v31 = vrot.slane %v563_v24, %v3118_v54  ;;  %2097 = vst.sshfl [vmem:[#allocation12 + $0x1] sm:$0x1 pattern:$0x73625140] %v563_v24  ;;  %2322 = vmatprep.subr.bf16.mxu0 %v2987_v9 }
 0x263   :  { %2354 = vmatprep.subr.bf16.mxu1 %v3001_v26  ;;  %931 = vmatprep.mubr.f32.mxu0 %v2877_v0 }
 0x264   :  { %1002 = vmatprep.mubr.f32.mxu1 %v2877_v0  ;;  %v572_v33 = vcombine.high %v570_v35, %v570_v35  ;;  %v586_v37 = vrot.slane %v570_v35, %v3118_v54  ;;  %v593_v38 = vrot.slane %v571_v28, %v3118_v54  ;;  %v601_v43 = vcombine.high %v579_v31, %v579_v31 }
 0x265   :  { %2098 = vst.sshfl [vmem:[#allocation12 + $0x9] sm:$0x1 pattern:$0x73625140] %v571_v28  ;;  %2324 = vmatpush1.bf16.msra.mxu0 %v2991_v16  ;;  %2356 = vmatpush1.bf16.msra.mxu1 %v3004_v30 }
 0x266   :  { %2099 = vst.sshfl [vmem:[#allocation12 + $0x21] sm:$0x1 pattern:$0x73625140] %v570_v35  ;;  %v600_v45 = vrot.slane %v572_v33, %v3118_v54  ;;  %v602_v49 = vcombine.high %v586_v37, %v586_v37  ;;  %v603_v50 = vcombine.high %v593_v38, %v593_v38  ;;  %615 = vst [vmem:[#allocation12 + $0x11] sm:$0x1] %v601_v43  ;;  %2326 = vmatprep.subr.bf16.mxu0 %v2998_v22 }
 0x267   :  { %2100 = vst.sshfl [vmem:[#allocation12 + $0x29] sm:$0x1 pattern:$0x73625140] %v572_v33  ;;  %2358 = vmatprep.subr.bf16.mxu1 %v3013_v39 }
 0x268   :  { %v604_v52 = vcombine.high %v600_v45, %v600_v45  ;;  %616 = vst [vmem:[#allocation12 + $0x19] sm:$0x1] %v603_v50  ;;  %619 = vst [vmem:[#allocation12 + $0x31] sm:$0x1] %v602_v49 }
 0x269   :  { %2328 = vmatpush1.bf16.msra.mxu0 %v3007_v32  ;;  %2360 = vmatpush1.bf16.msra.mxu1 %v3016_v44 }
 0x26a   :  { %620 = vst [vmem:[#allocation12 + $0x39] sm:$0x1] %v604_v52  ;;  %2330 = vmatprep.subr.bf16.mxu0 %v3011_v36  ;;  %2362 = vmatprep.subr.bf16.mxu1 %v3022_v48 }
 0x26d   :  { %2332 = vmatpush1.bf16.msra.mxu0 %v3019_v46  ;;  %2364 = vmatpush1.bf16.msra.mxu1 %v3028_v57 }
 0x26e   :  { %2334 = vmatprep.subr.bf16.mxu0 %v3025_v51  ;;  %2366 = vmatprep.subr.bf16.mxu1 %v3034_v60 }
 0x271   :  { %2336 = vmatpush1.bf16.msra.mxu0 %v3031_v58  ;;  %2368 = vmatpush1.bf16.msra.mxu1 %v3040_v7 }
 0x272   :  { %2338 = vmatprep.subr.bf16.mxu0 %v3037_v63  ;;  %2370 = vmatprep.subr.bf16.mxu1 %v3046_v12 }
 0x275   :  { %2340 = vmatpush1.bf16.msra.mxu0 %v3043_v10  ;;  %2372 = vmatpush1.bf16.msra.mxu1 %v3052_v25 }
 0x276   :  { %2342 = vmatprep.subr.bf16.mxu0 %v3049_v15  ;;  %2374 = vmatprep.subr.bf16.mxu1 %v3058_v29 }
 0x279   :  { %2344 = vmatpush1.bf16.msra.mxu0 %v3055_v27  ;;  %2376 = vmatpush1.bf16.msra.mxu1 %v3064_v40 }
 0x27a   :  { %2346 = vmatprep.subr.bf16.mxu0 %v3061_v34  ;;  %2378 = vmatprep.subr.bf16.mxu1 %v3070_v42 }
 0x27d   :  { %2348 = vmatpush1.bf16.msra.mxu0 %v3067_v41  ;;  %2380 = vmatpush1.bf16.msra.mxu1 %v3074_v47 }
 0x27e   :  { %2382 = vmatprep.subr.bf16.mxu0 %v2983_v4  ;;  %2414 = vmatprep.subr.bf16.mxu1 %v2993_v17 }
 0x333   :  { %v694_v56 = vpop.f32.mrb[4].mxu0  ;;  %v765_v59 = vpop.f32.mrb[4].mxu1 }
 0x334   :  { %v770_v61 = vadd.f32 %v694_v56, %v624_v53  ;;  %v696_v62 = vpop.f32.mrb[5].mxu0  ;;  %v767_v1 = vpop.f32.mrb[5].mxu1  ;;  %v772_v19 = vadd.f32 %v765_v59, %v626_v14 }
 0x335   :  { %v771_v2 = vadd.f32 %v696_v62, %v625_v55  ;;  %v773_v13 = vadd.f32 %v767_v1, %v627_v3 }
 0x336   :  { %v774_v5 = vmul.f32 0.5, %v770_v61  ;;  %v782_v20 = vmul.f32 0.5, %v772_v19  ;;  %v863_v19 = vld [vmem:[#allocation4 + $0x60] sm:$0xff] }
 0x337   :  { %v778_v6 = vmul.f32 0.5, %v771_v2 }
 0x338   :  { %2669 = vtanh.f32 %v774_v5 }
 0x339   :  { %2671 = vtanh.f32 %v778_v6 }
 0x33a   :  { %2673 = vtanh.f32 %v773_v13 }
 0x33b   :  { %2675 = vtanh.f32 %v782_v20  ;;  %v864_v20 = vld [vmem:[#allocation4 + $0x68] sm:$0xff] }
 0x342   :  { %v2670_v21 = vpop.eup %2669 }
 0x343   :  { %v776_v23 = vmul.f32 0.5, %v2670_v21  ;;  %v2672_v24 = vpop.eup %2671 }
 0x344   :  { %v780_v28 = vmul.f32 0.5, %v2672_v24  ;;  %v2674_v31 = vpop.eup %2673 }
 0x345   :  { %v777_v35 = vadd.f32 0.5, %v776_v23  ;;  %v2676_v45 = vpop.eup %2675 }
 0x346   :  { %v781_v33 = vadd.f32 0.5, %v780_v28  ;;  %v784_v49 = vmul.f32 0.5, %v2676_v45 }
 0x347   :  { %v788_v37 = vmul.f32 %v2674_v31, %v777_v35 }
 0x348   :  { %v787_v38 = vmul.f32 %v781_v33, %v3161_v11  ;;  %v785_v50 = vadd.f32 0.5, %v784_v49  ;;  %v866_v33 = vld [vmem:[#allocation4 + $0x78] sm:$0xff]  ;;  %v865_v49 = vld [vmem:[#allocation4 + $0x70] sm:$0xff] }
 0x34a   :  { %v3205_v43 = vadd.f32 %v788_v37, %v787_v38 }
 0x34c   :  { %2677 = vtanh.f32 %v3205_v43 }
 0x356   :  { %v2678_v52 = vpop.eup %2677 }
 0x357   :  { %v791_v53 = vmul.f32 %v2678_v52, %v785_v50 }
 0x359   :  { %v795_v55 = vcombine.high %v791_v53, %v791_v53  ;;  %v802_v56 = vrot.slane %v791_v53, %v3118_v54  ;;  %932 = vmatmul.mubr.f32.vlgmr.msra.gmra.mrb[6].mxu0 %v791_v53  ;;  %1003 = vmatmul.mubr.f32.vlgmr.msra.gmra.mrb[6].mxu1 %v791_v53 }
 0x35a   :  { %2384 = vmatpush1.bf16.msra.mxu0 %v2985_v8  ;;  %2416 = vmatpush1.bf16.msra.mxu1 %v2995_v18 }
 0x35b   :  { %v809_v11 = vrot.slane %v795_v55, %v3118_v54  ;;  %v810_v59 = vcombine.high %v802_v56, %v802_v56  ;;  %v818_v61 = vrot.slane %v802_v56, %v3118_v54  ;;  %2101 = vst.sshfl [vmem:[#allocation12 + $0x2] sm:$0x1 pattern:$0x73625140] %v802_v56  ;;  %2386 = vmatprep.subr.bf16.mxu0 %v2987_v9 }
 0x35c   :  { %2418 = vmatprep.subr.bf16.mxu1 %v3001_v26  ;;  %1170 = vmatprep.mubr.f32.mxu0 %v2877_v0 }
 0x35d   :  { %1241 = vmatprep.mubr.f32.mxu1 %v2877_v0  ;;  %v811_v62 = vcombine.high %v809_v11, %v809_v11  ;;  %v825_v1 = vrot.slane %v809_v11, %v3118_v54  ;;  %v832_v2 = vrot.slane %v810_v59, %v3118_v54  ;;  %v840_v3 = vcombine.high %v818_v61, %v818_v61 }
 0x35e   :  { %2102 = vst.sshfl [vmem:[#allocation12 + $0xa] sm:$0x1 pattern:$0x73625140] %v810_v59  ;;  %2388 = vmatpush1.bf16.msra.mxu0 %v2991_v16  ;;  %2420 = vmatpush1.bf16.msra.mxu1 %v3004_v30 }
 0x35f   :  { %2103 = vst.sshfl [vmem:[#allocation12 + $0x22] sm:$0x1 pattern:$0x73625140] %v809_v11  ;;  %v839_v5 = vrot.slane %v811_v62, %v3118_v54  ;;  %v841_v6 = vcombine.high %v825_v1, %v825_v1  ;;  %v842_v13 = vcombine.high %v832_v2, %v832_v2  ;;  %854 = vst [vmem:[#allocation12 + $0x12] sm:$0x1] %v840_v3  ;;  %2390 = vmatprep.subr.bf16.mxu0 %v2998_v22 }
 0x360   :  { %2104 = vst.sshfl [vmem:[#allocation12 + $0x2a] sm:$0x1 pattern:$0x73625140] %v811_v62  ;;  %2422 = vmatprep.subr.bf16.mxu1 %v3013_v39 }
 0x361   :  { %v843_v14 = vcombine.high %v839_v5, %v839_v5  ;;  %855 = vst [vmem:[#allocation12 + $0x1a] sm:$0x1] %v842_v13  ;;  %858 = vst [vmem:[#allocation12 + $0x32] sm:$0x1] %v841_v6 }
 0x362   :  { %2392 = vmatpush1.bf16.msra.mxu0 %v3007_v32  ;;  %2424 = vmatpush1.bf16.msra.mxu1 %v3016_v44 }
 0x363   :  { %859 = vst [vmem:[#allocation12 + $0x3a] sm:$0x1] %v843_v14  ;;  %2394 = vmatprep.subr.bf16.mxu0 %v3011_v36  ;;  %2426 = vmatprep.subr.bf16.mxu1 %v3022_v48 }
 0x366   :  { %2396 = vmatpush1.bf16.msra.mxu0 %v3019_v46  ;;  %2428 = vmatpush1.bf16.msra.mxu1 %v3028_v57 }
 0x367   :  { %2398 = vmatprep.subr.bf16.mxu0 %v3025_v51  ;;  %2430 = vmatprep.subr.bf16.mxu1 %v3034_v60 }
 0x36a   :  { %2400 = vmatpush1.bf16.msra.mxu0 %v3031_v58  ;;  %2432 = vmatpush1.bf16.msra.mxu1 %v3040_v7 }
 0x36b   :  { %2402 = vmatprep.subr.bf16.mxu0 %v3037_v63  ;;  %2434 = vmatprep.subr.bf16.mxu1 %v3046_v12 }
 0x36e   :  { %2404 = vmatpush1.bf16.msra.mxu0 %v3043_v10  ;;  %2436 = vmatpush1.bf16.msra.mxu1 %v3052_v25 }
 0x36f   :  { %2406 = vmatprep.subr.bf16.mxu0 %v3049_v15  ;;  %2438 = vmatprep.subr.bf16.mxu1 %v3058_v29 }
 0x372   :  { %2408 = vmatpush1.bf16.msra.mxu0 %v3055_v27  ;;  %2440 = vmatpush1.bf16.msra.mxu1 %v3064_v40 }
 0x373   :  { %2410 = vmatprep.subr.bf16.mxu0 %v3061_v34  ;;  %2442 = vmatprep.subr.bf16.mxu1 %v3070_v42 }
 0x376   :  { %2412 = vmatpush1.bf16.msra.mxu0 %v3067_v41  ;;  %2444 = vmatpush1.bf16.msra.mxu1 %v3074_v47 }
 0x377   :  { %2446 = vmatprep.subr.bf16.mxu0 %v2983_v4  ;;  %2478 = vmatprep.subr.bf16.mxu1 %v2993_v17 }
 0x42c   :  { %v933_v21 = vpop.f32.mrb[6].mxu0  ;;  %v1004_v23 = vpop.f32.mrb[6].mxu1 }
 0x42d   :  { %v1009_v24 = vadd.f32 %v933_v21, %v863_v19  ;;  %v935_v35 = vpop.f32.mrb[7].mxu0  ;;  %v1006_v28 = vpop.f32.mrb[7].mxu1  ;;  %v1011_v50 = vadd.f32 %v1004_v23, %v865_v49 }
 0x42e   :  { %v1010_v31 = vadd.f32 %v935_v35, %v864_v20  ;;  %v1012_v45 = vadd.f32 %v1006_v28, %v866_v33 }
 0x42f   :  { %v1013_v37 = vmul.f32 0.5, %v1009_v24  ;;  %v1021_v52 = vmul.f32 0.5, %v1011_v50  ;;  %v1102_v50 = vld [vmem:[#allocation4 + $0x80] sm:$0xff] }
 0x430   :  { %v1017_v38 = vmul.f32 0.5, %v1010_v31 }
 0x431   :  { %2679 = vtanh.f32 %v1013_v37 }
 0x432   :  { %2681 = vtanh.f32 %v1017_v38 }
 0x433   :  { %2683 = vtanh.f32 %v1012_v45 }
 0x434   :  { %2685 = vtanh.f32 %v1021_v52  ;;  %v1103_v52 = vld [vmem:[#allocation4 + $0x88] sm:$0xff] }
 0x43b   :  { %v2680_v53 = vpop.eup %2679 }
 0x43c   :  { %v1015_v55 = vmul.f32 0.5, %v2680_v53  ;;  %v2682_v56 = vpop.eup %2681 }
 0x43d   :  { %v1019_v59 = vmul.f32 0.5, %v2682_v56  ;;  %v2684_v61 = vpop.eup %2683 }
 0x43e   :  { %v1016_v11 = vadd.f32 0.5, %v1015_v55  ;;  %v2686_v5 = vpop.eup %2685 }
 0x43f   :  { %v1020_v62 = vadd.f32 0.5, %v1019_v59  ;;  %v1023_v6 = vmul.f32 0.5, %v2686_v5 }
 0x440   :  { %v1027_v1 = vmul.f32 %v2684_v61, %v1016_v11 }
 0x441   :  { %v1026_v2 = vmul.f32 %v1020_v62, %v3205_v43  ;;  %v1024_v13 = vadd.f32 0.5, %v1023_v6  ;;  %v1105_v62 = vld [vmem:[#allocation4 + $0x98] sm:$0xff]  ;;  %v1104_v6 = vld [vmem:[#allocation4 + $0x90] sm:$0xff] }
 0x443   :  { %v3249_v3 = vadd.f32 %v1027_v1, %v1026_v2 }
 0x445   :  { %2687 = vtanh.f32 %v3249_v3 }
 0x44f   :  { %v2688_v14 = vpop.eup %2687 }
 0x450   :  { %v1030_v19 = vmul.f32 %v2688_v14, %v1024_v13 }
 0x452   :  { %v1034_v20 = vcombine.high %v1030_v19, %v1030_v19  ;;  %v1041_v21 = vrot.slane %v1030_v19, %v3118_v54  ;;  %1171 = vmatmul.mubr.f32.vlgmr.msra.gmra.mrb[8].mxu0 %v1030_v19  ;;  %1242 = vmatmul.mubr.f32.vlgmr.msra.gmra.mrb[8].mxu1 %v1030_v19 }
 0x453   :  { %2448 = vmatpush1.bf16.msra.mxu0 %v2985_v8  ;;  %2480 = vmatpush1.bf16.msra.mxu1 %v2995_v18 }
 0x454   :  { %v1048_v43 = vrot.slane %v1034_v20, %v3118_v54  ;;  %v1049_v23 = vcombine.high %v1041_v21, %v1041_v21  ;;  %v1057_v24 = vrot.slane %v1041_v21, %v3118_v54  ;;  %2105 = vst.sshfl [vmem:[#allocation12 + $0x3] sm:$0x1 pattern:$0x73625140] %v1041_v21  ;;  %2450 = vmatprep.subr.bf16.mxu0 %v2987_v9 }
 0x455   :  { %2482 = vmatprep.subr.bf16.mxu1 %v3001_v26  ;;  %1409 = vmatprep.mubr.f32.mxu0 %v2877_v0 }
 0x456   :  { %1480 = vmatprep.mubr.f32.mxu1 %v2877_v0  ;;  %v1050_v35 = vcombine.high %v1048_v43, %v1048_v43  ;;  %v1064_v28 = vrot.slane %v1048_v43, %v3118_v54  ;;  %v1071_v31 = vrot.slane %v1049_v23, %v3118_v54  ;;  %v1079_v33 = vcombine.high %v1057_v24, %v1057_v24 }
 0x457   :  { %2106 = vst.sshfl [vmem:[#allocation12 + $0xb] sm:$0x1 pattern:$0x73625140] %v1049_v23  ;;  %2452 = vmatpush1.bf16.msra.mxu0 %v2991_v16  ;;  %2484 = vmatpush1.bf16.msra.mxu1 %v3004_v30 }
 0x458   :  { %2107 = vst.sshfl [vmem:[#allocation12 + $0x23] sm:$0x1 pattern:$0x73625140] %v1048_v43  ;;  %v1078_v37 = vrot.slane %v1050_v35, %v3118_v54  ;;  %v1080_v38 = vcombine.high %v1064_v28, %v1064_v28  ;;  %v1081_v45 = vcombine.high %v1071_v31, %v1071_v31  ;;  %1093 = vst [vmem:[#allocation12 + $0x13] sm:$0x1] %v1079_v33  ;;  %2454 = vmatprep.subr.bf16.mxu0 %v2998_v22 }
 0x459   :  { %2108 = vst.sshfl [vmem:[#allocation12 + $0x2b] sm:$0x1 pattern:$0x73625140] %v1050_v35  ;;  %2486 = vmatprep.subr.bf16.mxu1 %v3013_v39 }
 0x45a   :  { %v1082_v49 = vcombine.high %v1078_v37, %v1078_v37  ;;  %1094 = vst [vmem:[#allocation12 + $0x1b] sm:$0x1] %v1081_v45  ;;  %1097 = vst [vmem:[#allocation12 + $0x33] sm:$0x1] %v1080_v38 }
 0x45b   :  { %2456 = vmatpush1.bf16.msra.mxu0 %v3007_v32  ;;  %2488 = vmatpush1.bf16.msra.mxu1 %v3016_v44 }
 0x45c   :  { %1098 = vst [vmem:[#allocation12 + $0x3b] sm:$0x1] %v1082_v49  ;;  %2458 = vmatprep.subr.bf16.mxu0 %v3011_v36  ;;  %2490 = vmatprep.subr.bf16.mxu1 %v3022_v48 }
 0x45f   :  { %2460 = vmatpush1.bf16.msra.mxu0 %v3019_v46  ;;  %2492 = vmatpush1.bf16.msra.mxu1 %v3028_v57 }
 0x460   :  { %2462 = vmatprep.subr.bf16.mxu0 %v3025_v51  ;;  %2494 = vmatprep.subr.bf16.mxu1 %v3034_v60 }
 0x463   :  { %2464 = vmatpush1.bf16.msra.mxu0 %v3031_v58  ;;  %2496 = vmatpush1.bf16.msra.mxu1 %v3040_v7 }
 0x464   :  { %2466 = vmatprep.subr.bf16.mxu0 %v3037_v63  ;;  %2498 = vmatprep.subr.bf16.mxu1 %v3046_v12 }
 0x467   :  { %2468 = vmatpush1.bf16.msra.mxu0 %v3043_v10  ;;  %2500 = vmatpush1.bf16.msra.mxu1 %v3052_v25 }
 0x468   :  { %2470 = vmatprep.subr.bf16.mxu0 %v3049_v15  ;;  %2502 = vmatprep.subr.bf16.mxu1 %v3058_v29 }
 0x46b   :  { %2472 = vmatpush1.bf16.msra.mxu0 %v3055_v27  ;;  %2504 = vmatpush1.bf16.msra.mxu1 %v3064_v40 }
 0x46c   :  { %2474 = vmatprep.subr.bf16.mxu0 %v3061_v34  ;;  %2506 = vmatprep.subr.bf16.mxu1 %v3070_v42 }
 0x46f   :  { %2476 = vmatpush1.bf16.msra.mxu0 %v3067_v41  ;;  %2508 = vmatpush1.bf16.msra.mxu1 %v3074_v47 }
 0x470   :  { %2510 = vmatprep.subr.bf16.mxu0 %v2983_v4  ;;  %2542 = vmatprep.subr.bf16.mxu1 %v2993_v17 }
 0x525   :  { %v1172_v53 = vpop.f32.mrb[8].mxu0  ;;  %v1243_v55 = vpop.f32.mrb[8].mxu1 }
 0x526   :  { %v1248_v56 = vadd.f32 %v1172_v53, %v1102_v50  ;;  %v1174_v11 = vpop.f32.mrb[9].mxu0  ;;  %v1245_v59 = vpop.f32.mrb[9].mxu1  ;;  %v1250_v13 = vadd.f32 %v1243_v55, %v1104_v6 }
 0x527   :  { %v1249_v61 = vadd.f32 %v1174_v11, %v1103_v52  ;;  %v1251_v5 = vadd.f32 %v1245_v59, %v1105_v62 }
 0x528   :  { %v1252_v1 = vmul.f32 0.5, %v1248_v56  ;;  %v1260_v14 = vmul.f32 0.5, %v1250_v13  ;;  %v1341_v13 = vld [vmem:[#allocation4 + $0xa0] sm:$0xff] }
 0x529   :  { %v1256_v2 = vmul.f32 0.5, %v1249_v61 }
 0x52a   :  { %2689 = vtanh.f32 %v1252_v1 }
 0x52b   :  { %2691 = vtanh.f32 %v1256_v2 }
 0x52c   :  { %2693 = vtanh.f32 %v1251_v5 }
 0x52d   :  { %2695 = vtanh.f32 %v1260_v14  ;;  %v1342_v14 = vld [vmem:[#allocation4 + $0xa8] sm:$0xff] }
 0x534   :  { %v2690_v19 = vpop.eup %2689 }
 0x535   :  { %v1254_v20 = vmul.f32 0.5, %v2690_v19  ;;  %v2692_v21 = vpop.eup %2691 }
 0x536   :  { %v1258_v23 = vmul.f32 0.5, %v2692_v21  ;;  %v2694_v24 = vpop.eup %2693 }
 0x537   :  { %v1255_v43 = vadd.f32 0.5, %v1254_v20  ;;  %v2696_v37 = vpop.eup %2695 }
 0x538   :  { %v1259_v35 = vadd.f32 0.5, %v1258_v23  ;;  %v1262_v38 = vmul.f32 0.5, %v2696_v37 }
 0x539   :  { %v1266_v28 = vmul.f32 %v2694_v24, %v1255_v43 }
 0x53a   :  { %v1265_v31 = vmul.f32 %v1259_v35, %v3249_v3  ;;  %v1263_v45 = vadd.f32 0.5, %v1262_v38  ;;  %v1344_v35 = vld [vmem:[#allocation4 + $0xb8] sm:$0xff]  ;;  %v1343_v38 = vld [vmem:[#allocation4 + $0xb0] sm:$0xff] }
 0x53c   :  { %v3293_v33 = vadd.f32 %v1266_v28, %v1265_v31 }
 0x53e   :  { %2697 = vtanh.f32 %v3293_v33 }
 0x548   :  { %v2698_v49 = vpop.eup %2697 }
 0x549   :  { %v1269_v50 = vmul.f32 %v2698_v49, %v1263_v45 }
 0x54b   :  { %v1273_v52 = vcombine.high %v1269_v50, %v1269_v50  ;;  %v1280_v53 = vrot.slane %v1269_v50, %v3118_v54  ;;  %1410 = vmatmul.mubr.f32.vlgmr.msra.gmra.mrb[10].mxu0 %v1269_v50  ;;  %1481 = vmatmul.mubr.f32.vlgmr.msra.gmra.mrb[10].mxu1 %v1269_v50 }
 0x54c   :  { %2512 = vmatpush1.bf16.msra.mxu0 %v2985_v8  ;;  %2544 = vmatpush1.bf16.msra.mxu1 %v2995_v18 }
 0x54d   :  { %v1287_v3 = vrot.slane %v1273_v52, %v3118_v54  ;;  %v1288_v55 = vcombine.high %v1280_v53, %v1280_v53  ;;  %v1296_v56 = vrot.slane %v1280_v53, %v3118_v54  ;;  %2109 = vst.sshfl [vmem:[#allocation12 + $0x4] sm:$0x1 pattern:$0x73625140] %v1280_v53  ;;  %2514 = vmatprep.subr.bf16.mxu0 %v2987_v9 }
 0x54e   :  { %2546 = vmatprep.subr.bf16.mxu1 %v3001_v26  ;;  %1648 = vmatprep.mubr.f32.mxu0 %v2877_v0 }
 0x54f   :  { %1719 = vmatprep.mubr.f32.mxu1 %v2877_v0  ;;  %v1289_v11 = vcombine.high %v1287_v3, %v1287_v3  ;;  %v1303_v59 = vrot.slane %v1287_v3, %v3118_v54  ;;  %v1310_v61 = vrot.slane %v1288_v55, %v3118_v54  ;;  %v1318_v62 = vcombine.high %v1296_v56, %v1296_v56 }
 0x550   :  { %2110 = vst.sshfl [vmem:[#allocation12 + $0xc] sm:$0x1 pattern:$0x73625140] %v1288_v55  ;;  %2516 = vmatpush1.bf16.msra.mxu0 %v2991_v16  ;;  %2548 = vmatpush1.bf16.msra.mxu1 %v3004_v30 }
 0x551   :  { %2111 = vst.sshfl [vmem:[#allocation12 + $0x24] sm:$0x1 pattern:$0x73625140] %v1287_v3  ;;  %v1317_v1 = vrot.slane %v1289_v11, %v3118_v54  ;;  %v1319_v2 = vcombine.high %v1303_v59, %v1303_v59  ;;  %v1320_v5 = vcombine.high %v1310_v61, %v1310_v61  ;;  %1332 = vst [vmem:[#allocation12 + $0x14] sm:$0x1] %v1318_v62  ;;  %2518 = vmatprep.subr.bf16.mxu0 %v2998_v22 }
 0x552   :  { %2112 = vst.sshfl [vmem:[#allocation12 + $0x2c] sm:$0x1 pattern:$0x73625140] %v1289_v11  ;;  %2550 = vmatprep.subr.bf16.mxu1 %v3013_v39 }
 0x553   :  { %v1321_v6 = vcombine.high %v1317_v1, %v1317_v1  ;;  %1333 = vst [vmem:[#allocation12 + $0x1c] sm:$0x1] %v1320_v5  ;;  %1336 = vst [vmem:[#allocation12 + $0x34] sm:$0x1] %v1319_v2 }
 0x554   :  { %2520 = vmatpush1.bf16.msra.mxu0 %v3007_v32  ;;  %2552 = vmatpush1.bf16.msra.mxu1 %v3016_v44 }
 0x555   :  { %1337 = vst [vmem:[#allocation12 + $0x3c] sm:$0x1] %v1321_v6  ;;  %2522 = vmatprep.subr.bf16.mxu0 %v3011_v36  ;;  %2554 = vmatprep.subr.bf16.mxu1 %v3022_v48 }
 0x558   :  { %2524 = vmatpush1.bf16.msra.mxu0 %v3019_v46  ;;  %2556 = vmatpush1.bf16.msra.mxu1 %v3028_v57 }
 0x559   :  { %2526 = vmatprep.subr.bf16.mxu0 %v3025_v51  ;;  %2558 = vmatprep.subr.bf16.mxu1 %v3034_v60 }
 0x55c   :  { %2528 = vmatpush1.bf16.msra.mxu0 %v3031_v58  ;;  %2560 = vmatpush1.bf16.msra.mxu1 %v3040_v7 }
 0x55d   :  { %2530 = vmatprep.subr.bf16.mxu0 %v3037_v63  ;;  %2562 = vmatprep.subr.bf16.mxu1 %v3046_v12 }
 0x560   :  { %2532 = vmatpush1.bf16.msra.mxu0 %v3043_v10  ;;  %2564 = vmatpush1.bf16.msra.mxu1 %v3052_v25 }
 0x561   :  { %2534 = vmatprep.subr.bf16.mxu0 %v3049_v15  ;;  %2566 = vmatprep.subr.bf16.mxu1 %v3058_v29 }
 0x564   :  { %2536 = vmatpush1.bf16.msra.mxu0 %v3055_v27  ;;  %2568 = vmatpush1.bf16.msra.mxu1 %v3064_v40 }
 0x565   :  { %2538 = vmatprep.subr.bf16.mxu0 %v3061_v34  ;;  %2570 = vmatprep.subr.bf16.mxu1 %v3070_v42 }
 0x568   :  { %2540 = vmatpush1.bf16.msra.mxu0 %v3067_v41  ;;  %2572 = vmatpush1.bf16.msra.mxu1 %v3074_v47 }
 0x569   :  { %2574 = vmatprep.subr.bf16.mxu0 %v2983_v4  ;;  %2606 = vmatprep.subr.bf16.mxu1 %v2993_v17 }
 0x61e   :  { %v1411_v19 = vpop.f32.mrb[10].mxu0  ;;  %v1482_v20 = vpop.f32.mrb[10].mxu1 }
 0x61f   :  { %v1487_v21 = vadd.f32 %v1411_v19, %v1341_v13  ;;  %v1413_v43 = vpop.f32.mrb[11].mxu0  ;;  %v1484_v23 = vpop.f32.mrb[11].mxu1  ;;  %v1489_v45 = vadd.f32 %v1482_v20, %v1343_v38 }
 0x620   :  { %v1488_v24 = vadd.f32 %v1413_v43, %v1342_v14  ;;  %v1490_v37 = vadd.f32 %v1484_v23, %v1344_v35 }
 0x621   :  { %v1491_v28 = vmul.f32 0.5, %v1487_v21  ;;  %v1499_v4 = vmul.f32 0.5, %v1489_v45 }
 0x622   :  { %v1495_v31 = vmul.f32 0.5, %v1488_v24 }
 0x623   :  { %2699 = vtanh.f32 %v1491_v28 }
 0x624   :  { %2701 = vtanh.f32 %v1495_v31 }
 0x625   :  { %2703 = vtanh.f32 %v1490_v37 }
 0x626   :  { %2705 = vtanh.f32 %v1499_v4 }
 0x62d   :  { %v2700_v49 = vpop.eup %2699 }
 0x62e   :  { %v1493_v17 = vmul.f32 0.5, %v2700_v49  ;;  %v2702_v50 = vpop.eup %2701 }
 0x62f   :  { %v1497_v53 = vmul.f32 0.5, %v2702_v50  ;;  %v2704_v3 = vpop.eup %2703 }
 0x630   :  { %v1494_v52 = vadd.f32 0.5, %v1493_v17  ;;  %v2706_v61 = vpop.eup %2705 }
 0x631   :  { %v1498_v55 = vadd.f32 0.5, %v1497_v53  ;;  %v1501_v62 = vmul.f32 0.5, %v2706_v61 }
 0x632   :  { %v1505_v56 = vmul.f32 %v2704_v3, %v1494_v52 }
 0x633   :  { %v1504_v11 = vmul.f32 %v1498_v55, %v3293_v33  ;;  %v1502_v1 = vadd.f32 0.5, %v1501_v62 }
 0x635   :  { %v3337_v59 = vadd.f32 %v1505_v56, %v1504_v11  ;;  %v1819_v11 = vld [vmem:[#allocation4 + $0xe0] sm:$0xff] }
 0x637   :  { %2707 = vtanh.f32 %v3337_v59 }
 0x641   :  { %v2708_v2 = vpop.eup %2707 }
 0x642   :  { %v1508_v5 = vmul.f32 %v2708_v2, %v1502_v1 }
 0x644   :  { %v1512_v6 = vcombine.high %v1508_v5, %v1508_v5  ;;  %v1519_v13 = vrot.slane %v1508_v5, %v3118_v54  ;;  %1649 = vmatmul.mubr.f32.vlgmr.msra.gmra.mrb[12].mxu0 %v1508_v5  ;;  %1720 = vmatmul.mubr.f32.vlgmr.msra.gmra.mrb[12].mxu1 %v1508_v5 }
 0x645   :  { %2576 = vmatpush1.bf16.msra.mxu0 %v2985_v8  ;;  %2608 = vmatpush1.bf16.msra.mxu1 %v2995_v18 }
 0x646   :  { %v1526_v33 = vrot.slane %v1512_v6, %v3118_v54  ;;  %v1527_v14 = vcombine.high %v1519_v13, %v1519_v13  ;;  %v1535_v19 = vrot.slane %v1519_v13, %v3118_v54  ;;  %2113 = vst.sshfl [vmem:[#allocation12 + $0x5] sm:$0x1 pattern:$0x73625140] %v1519_v13  ;;  %2578 = vmatprep.subr.bf16.mxu0 %v2987_v9  ;;  %v1822_v13 = vld [vmem:[#allocation4 + $0xf8] sm:$0xff] }
 0x647   :  { %2610 = vmatprep.subr.bf16.mxu1 %v3001_v26  ;;  %1887 = vmatprep.mubr.f32.mxu0 %v2877_v0 }
 0x648   :  { %1958 = vmatprep.mubr.f32.mxu1 %v2877_v0  ;;  %v1528_v20 = vcombine.high %v1526_v33, %v1526_v33  ;;  %v1542_v21 = vrot.slane %v1526_v33, %v3118_v54  ;;  %v1549_v8 = vrot.slane %v1527_v14, %v3118_v54  ;;  %v1557_v18 = vcombine.high %v1535_v19, %v1535_v19 }
 0x649   :  { %2114 = vst.sshfl [vmem:[#allocation12 + $0xd] sm:$0x1 pattern:$0x73625140] %v1527_v14  ;;  %2580 = vmatpush1.bf16.msra.mxu0 %v2991_v16  ;;  %2612 = vmatpush1.bf16.msra.mxu1 %v3004_v30  ;;  %v1580_v16 = vld [vmem:[#allocation4 + $0xc0] sm:$0xff] }
 0x64a   :  { %2115 = vst.sshfl [vmem:[#allocation12 + $0x25] sm:$0x1 pattern:$0x73625140] %v1526_v33  ;;  %v1556_v9 = vrot.slane %v1528_v20, %v3118_v54  ;;  %v1558_v43 = vcombine.high %v1542_v21, %v1542_v21  ;;  %v1559_v26 = vcombine.high %v1549_v8, %v1549_v8  ;;  %1571 = vst [vmem:[#allocation12 + $0x15] sm:$0x1] %v1557_v18  ;;  %2582 = vmatprep.subr.bf16.mxu0 %v2998_v22 }
 0x64b   :  { %2116 = vst.sshfl [vmem:[#allocation12 + $0x2d] sm:$0x1 pattern:$0x73625140] %v1528_v20  ;;  %2614 = vmatprep.subr.bf16.mxu1 %v3013_v39  ;;  %v1581_v22 = vld [vmem:[#allocation4 + $0xc8] sm:$0xff]  ;;  %v1821_v20 = vld [vmem:[#allocation4 + $0xf0] sm:$0xff] }
 0x64c   :  { %v1560_v0 = vcombine.high %v1556_v9, %v1556_v9  ;;  %1572 = vst [vmem:[#allocation12 + $0x1d] sm:$0x1] %v1559_v26  ;;  %1575 = vst [vmem:[#allocation12 + $0x35] sm:$0x1] %v1558_v43 }
 0x64d   :  { %2584 = vmatpush1.bf16.msra.mxu0 %v3007_v32  ;;  %2616 = vmatpush1.bf16.msra.mxu1 %v3016_v44 }
 0x64e   :  { %1576 = vst [vmem:[#allocation12 + $0x3d] sm:$0x1] %v1560_v0  ;;  %2586 = vmatprep.subr.bf16.mxu0 %v3011_v36  ;;  %2618 = vmatprep.subr.bf16.mxu1 %v3022_v48  ;;  %v1583_v48 = vld [vmem:[#allocation4 + $0xd8] sm:$0xff] }
 0x651   :  { %2588 = vmatpush1.bf16.msra.mxu0 %v3019_v46  ;;  %2620 = vmatpush1.bf16.msra.mxu1 %v3028_v57 }
 0x652   :  { %2590 = vmatprep.subr.bf16.mxu0 %v3025_v51  ;;  %2622 = vmatprep.subr.bf16.mxu1 %v3034_v60  ;;  %v1582_v60 = vld [vmem:[#allocation4 + $0xd0] sm:$0xff] }
 0x655   :  { %2592 = vmatpush1.bf16.msra.mxu0 %v3031_v58  ;;  %2624 = vmatpush1.bf16.msra.mxu1 %v3040_v7 }
 0x656   :  { %2594 = vmatprep.subr.bf16.mxu0 %v3037_v63  ;;  %2626 = vmatprep.subr.bf16.mxu1 %v3046_v12 }
 0x659   :  { %2596 = vmatpush1.bf16.msra.mxu0 %v3043_v10  ;;  %2628 = vmatpush1.bf16.msra.mxu1 %v3052_v25 }
 0x65a   :  { %2598 = vmatprep.subr.bf16.mxu0 %v3049_v15  ;;  %2630 = vmatprep.subr.bf16.mxu1 %v3058_v29 }
 0x65d   :  { %2600 = vmatpush1.bf16.msra.mxu0 %v3055_v27  ;;  %2632 = vmatpush1.bf16.msra.mxu1 %v3064_v40 }
 0x65e   :  { %2602 = vmatprep.subr.bf16.mxu0 %v3061_v34  ;;  %2634 = vmatprep.subr.bf16.mxu1 %v3070_v42 }
 0x661   :  { %2604 = vmatpush1.bf16.msra.mxu0 %v3067_v41  ;;  %2636 = vmatpush1.bf16.msra.mxu1 %v3074_v47 }
 0x717   :  { %v1650_v30 = vpop.f32.mrb[12].mxu0  ;;  %v1721_v32 = vpop.f32.mrb[12].mxu1 }
 0x718   :  { %v1726_v36 = vadd.f32 %v1650_v30, %v1580_v16  ;;  %v1652_v39 = vpop.f32.mrb[13].mxu0  ;;  %v1723_v44 = vpop.f32.mrb[13].mxu1  ;;  %v1728_v63 = vadd.f32 %v1721_v32, %v1582_v60 }
 0x719   :  { %v1727_v46 = vadd.f32 %v1652_v39, %v1581_v22  ;;  %v1729_v58 = vadd.f32 %v1723_v44, %v1583_v48 }
 0x71a   :  { %v1730_v51 = vmul.f32 0.5, %v1726_v36  ;;  %v1738_v7 = vmul.f32 0.5, %v1728_v63 }
 0x71b   :  { %v1734_v57 = vmul.f32 0.5, %v1727_v46 }
 0x71c   :  { %2709 = vtanh.f32 %v1730_v51 }
 0x71d   :  { %2711 = vtanh.f32 %v1734_v57 }
 0x71e   :  { %2713 = vtanh.f32 %v1729_v58 }
 0x71f   :  { %2715 = vtanh.f32 %v1738_v7 }
 0x726   :  { %v2710_v10 = vpop.eup %2709 }
 0x727   :  { %v1732_v12 = vmul.f32 0.5, %v2710_v10  ;;  %v2712_v15 = vpop.eup %2711 }
 0x728   :  { %v1736_v27 = vmul.f32 0.5, %v2712_v15  ;;  %v2714_v29 = vpop.eup %2713 }
 0x729   :  { %v1733_v25 = vadd.f32 0.5, %v1732_v12  ;;  %v2716_v47 = vpop.eup %2715 }
 0x72a   :  { %v1737_v34 = vadd.f32 0.5, %v1736_v27  ;;  %v1740_v23 = vmul.f32 0.5, %v2716_v47 }
 0x72b   :  { %v1744_v40 = vmul.f32 %v2714_v29, %v1733_v25 }
 0x72c   :  { %v1743_v41 = vmul.f32 %v1737_v34, %v3337_v59  ;;  %v1741_v24 = vadd.f32 0.5, %v1740_v23  ;;  %v1820_v59 = vld [vmem:[#allocation4 + $0xe8] sm:$0xff] }
 0x72e   :  { %v1745_v42 = vadd.f32 %v1744_v40, %v1743_v41 }
 0x730   :  { %2717 = vtanh.f32 %v1745_v42 }
 0x73a   :  { %v2718_v35 = vpop.eup %2717 }
 0x73b   :  { %v1747_v28 = vmul.f32 %v2718_v35, %v1741_v24 }
 0x73d   :  { %v1751_v31 = vcombine.high %v1747_v28, %v1747_v28  ;;  %v1758_v37 = vrot.slane %v1747_v28, %v3118_v54  ;;  %1888 = vmatmul.mubr.f32.vlgmr.msra.gmra.mrb[14].mxu0 %v1747_v28  ;;  %1959 = vmatmul.mubr.f32.vlgmr.msra.gmra.mrb[14].mxu1 %v1747_v28 }
 0x73f   :  { %v1765_v38 = vrot.slane %v1751_v31, %v3118_v54  ;;  %v1766_v45 = vcombine.high %v1758_v37, %v1758_v37  ;;  %v1774_v4 = vrot.slane %v1758_v37, %v3118_v54  ;;  %2117 = vst.sshfl [vmem:[#allocation12 + $0x6] sm:$0x1 pattern:$0x73625140] %v1758_v37 }
 0x741   :  { %v1767_v49 = vcombine.high %v1765_v38, %v1765_v38  ;;  %v1781_v17 = vrot.slane %v1765_v38, %v3118_v54  ;;  %v1788_v50 = vrot.slane %v1766_v45, %v3118_v54  ;;  %v1796_v52 = vcombine.high %v1774_v4, %v1774_v4  ;;  %2118 = vst.sshfl [vmem:[#allocation12 + $0xe] sm:$0x1 pattern:$0x73625140] %v1766_v45 }
 0x742   :  { %2119 = vst.sshfl [vmem:[#allocation12 + $0x26] sm:$0x1 pattern:$0x73625140] %v1765_v38 }
 0x743   :  { %v1795_v53 = vrot.slane %v1767_v49, %v3118_v54  ;;  %v1797_v3 = vcombine.high %v1781_v17, %v1781_v17  ;;  %v1798_v55 = vcombine.high %v1788_v50, %v1788_v50  ;;  %1810 = vst [vmem:[#allocation12 + $0x16] sm:$0x1] %v1796_v52  ;;  %2120 = vst.sshfl [vmem:[#allocation12 + $0x2e] sm:$0x1 pattern:$0x73625140] %v1767_v49 }
 0x745   :  { %v1799_v56 = vcombine.high %v1795_v53, %v1795_v53  ;;  %1811 = vst [vmem:[#allocation12 + $0x1e] sm:$0x1] %v1798_v55  ;;  %1814 = vst [vmem:[#allocation12 + $0x36] sm:$0x1] %v1797_v3 }
 0x747   :  { %1815 = vst [vmem:[#allocation12 + $0x3e] sm:$0x1] %v1799_v56 }
 0x810   :  { %v1889_v61 = vpop.f32.mrb[14].mxu0  ;;  %v1960_v62 = vpop.f32.mrb[14].mxu1 }
 0x811   :  { %v1965_v1 = vadd.f32 %v1889_v61, %v1819_v11  ;;  %v1891_v2 = vpop.f32.mrb[15].mxu0  ;;  %v1962_v5 = vpop.f32.mrb[15].mxu1  ;;  %v1967_v21 = vadd.f32 %v1960_v62, %v1821_v20 }
 0x812   :  { %v1966_v6 = vadd.f32 %v1891_v2, %v1820_v59  ;;  %v1968_v19 = vadd.f32 %v1962_v5, %v1822_v13 }
 0x813   :  { %v1969_v33 = vmul.f32 0.5, %v1965_v1  ;;  %v1977_v8 = vmul.f32 0.5, %v1967_v21 }
 0x814   :  { %v1973_v14 = vmul.f32 0.5, %v1966_v6 }
 0x815   :  { %2719 = vtanh.f32 %v1969_v33 }
 0x816   :  { %2721 = vtanh.f32 %v1973_v14 }
 0x817   :  { %2723 = vtanh.f32 %v1968_v19 }
 0x818   :  { %2725 = vtanh.f32 %v1977_v8 }
 0x81f   :  { %v2720_v18 = vpop.eup %2719 }
 0x820   :  { %v1971_v9 = vmul.f32 0.5, %v2720_v18  ;;  %v2722_v43 = vpop.eup %2721 }
 0x821   :  { %v1975_v0 = vmul.f32 0.5, %v2722_v43  ;;  %v2724_v16 = vpop.eup %2723 }
 0x822   :  { %v1972_v26 = vadd.f32 0.5, %v1971_v9 }
 0x823   :  { %v1976_v22 = vadd.f32 0.5, %v1975_v0 }
 0x824   :  { %v1983_v30 = vmul.f32 %v2724_v16, %v1972_v26 }
 0x825   :  { %v1982_v32 = vmul.f32 %v1976_v22, %v1745_v42 }
 0x827   :  { %v1984_v36 = vadd.f32 %v1983_v30, %v1982_v32 }
 0x829   :  { %2727 = vtanh.f32 %v1984_v36  ;;  %2059 = vst [vmem:[#allocation13] sm:$0xff] %v1984_v36 }
 0x82a   :  { %2828 = shalt.err (!%p2825_p8)
}
 0x82b   :  { %s2829_s18 = scalar_lea.hbm %s3420_s5, 128 }
 0x82c   :  { %p2830_p9 = scmp.ne.s32.totalorder %s3420_s5, %s2829_s18  ;;  %p2833_p10 = scmp.lt.u32.totalorder %s2829_s18, %s3420_s5 }
 0x82e   :  { %p2835_p11 = pnand %p2833_p10, %p2830_p9 }
 0x830   :  { %2838 = shalt.err (!%p2835_p11)
}
 0x831   :  { %2081 = dma.vmem_to_hbm [thread:$0]  %s2079_s1, 128, %s3420_s5, [#allocation14]   ;;  %v2726_v39 = vpop.eup %2725 }
 0x832   :  { %v1979_v44 = vmul.f32 0.5, %v2726_v39  ;;  %s2880_s5 = smov [#allocation12]  }
 0x833   :  { %v2728_v48 = vpop.eup %2727  ;;  %s2065_s26 = sshll.u32 %s2880_s5, 4  ;;  %s2066_s26 = int_to_ptr.vmem [resolvable:$true] %s2065_s26 }
 0x834   :  { %v1980_v46 = vadd.f32 0.5, %v1979_v44  ;;  %s2839_s27 = scalar_lea.vmem %s2066_s26, 1024  ;;  %p2844_p13 = scmp.lt.s32.totalorder %s2066_s26, %s2066_s26 }
 0x835   :  { %p2840_p12 = scmp.ne.s32.totalorder %s2066_s26, %s2839_s27  ;;  %p2845_p0 = scmp.lt.s32.totalorder %s2839_s27, %s2839_s27 }
 0x836   :  { %v1986_v51 = vmul.f32 %v2728_v48, %v1980_v46 }
 0x837   :  { %p2846_p1 = por %p2845_p0, %p2844_p13 }
 0x838   :  { %v1990_v57 = vcombine.high %v1986_v51, %v1986_v51  ;;  %v1997_v58 = vrot.slane %v1986_v51, %v3118_v54 }
 0x839   :  { %p2847_p2 = pnand %p2846_p1, %p2840_p12 }
 0x83a   :  { %v2004_v60 = vrot.slane %v1990_v57, %v3118_v54  ;;  %v2005_v63 = vcombine.high %v1997_v58, %v1997_v58  ;;  %v2013_v7 = vrot.slane %v1997_v58, %v3118_v54  ;;  %2121 = vst.sshfl [vmem:[#allocation12 + $0x7] sm:$0x1 pattern:$0x73625140] %v1997_v58 }
 0x83c   :  { %v2006_v10 = vcombine.high %v2004_v60, %v2004_v60  ;;  %v2020_v12 = vrot.slane %v2004_v60, %v3118_v54  ;;  %v2027_v15 = vrot.slane %v2005_v63, %v3118_v54  ;;  %v2035_v25 = vcombine.high %v2013_v7, %v2013_v7  ;;  %2122 = vst.sshfl [vmem:[#allocation12 + $0xf] sm:$0x1 pattern:$0x73625140] %v2005_v63 }
 0x83d   :  { %2123 = vst.sshfl [vmem:[#allocation12 + $0x27] sm:$0x1 pattern:$0x73625140] %v2004_v60 }
 0x83e   :  { %v2034_v27 = vrot.slane %v2006_v10, %v3118_v54  ;;  %v2036_v29 = vcombine.high %v2020_v12, %v2020_v12  ;;  %v2037_v34 = vcombine.high %v2027_v15, %v2027_v15  ;;  %2049 = vst [vmem:[#allocation12 + $0x17] sm:$0x1] %v2035_v25  ;;  %2124 = vst.sshfl [vmem:[#allocation12 + $0x2f] sm:$0x1 pattern:$0x73625140] %v2006_v10 }
 0x840   :  { %v2038_v40 = vcombine.high %v2034_v27, %v2034_v27  ;;  %2050 = vst [vmem:[#allocation12 + $0x1f] sm:$0x1] %v2037_v34  ;;  %2053 = vst [vmem:[#allocation12 + $0x37] sm:$0x1] %v2036_v29 }
 0x842   :  { %2054 = vst [vmem:[#allocation12 + $0x3f] sm:$0x1] %v2038_v40 }
 0x843   :  { %2850 = shalt.err (!%p2847_p2)
}
 0x844   :  { %s2851_s0 = scalar_lea.hbm %s3419_s4, 1024 }
 0x845   :  { %p2852_p3 = scmp.ne.s32.totalorder %s3419_s4, %s2851_s0  ;;  %p2855_p4 = scmp.lt.u32.totalorder %s2851_s0, %s3419_s4 }
 0x847   :  { %p2857_p5 = pnand %p2855_p4, %p2852_p3 }
 0x849   :  { %2860 = shalt.err (!%p2857_p5)
}
 0x84a   :  { %s2881_s8 = smov 128   ;;  %s2882_s9 = smov 8  }
 0x84b   :  { %2071 = dma.vmem_to_hbm [thread:$0]  %s2066_s26, 1024, %s3419_s4, [#allocation6], %s2881_s8, %s2881_s8, %s2882_s9  }
 0x84c   :  { %2867 = dma.done.wait [#allocation6], 1024  }
 0x84d   :  { %2868 = vsyncadd [#allocation6], 4294966272 }
 0x84e   :  { %2869 = dma.done.wait [#allocation14], 128  }
 0x84f   :  { %2870 = vsyncadd [#allocation14], 4294967168 }
 0x850   :  { %2088 = vsyncpa [#allocation5], 1 }
 0x851   :  { %2089 = vsyncpa [#allocation8], 1 }
 0x852   :  { %2090 = vsyncpa [#allocation11], 1 }
 0x853   :  { %2091 = vsyncpa [#allocation6], 1 }
 0x854   :  { %2092 = vsyncpa [#allocation14], 1 }

</bundles_post_ra>
